<compile_context>
chip_gen: v7x
topology: tpu7x:2x2x1
jax: 0.10.0
libtpu: 0.0.40
codegen_flags: <defaults>
</compile_context>

<pallas_src>
import functools

import jax
import jax.numpy as jnp
from jax.experimental import pallas as pl
from jax.experimental.pallas import tpu as pltpu

LANE = 128
_MIB = 1024 * 1024


def _round_up(v, m):
    return ((v + m - 1) // m) * m


def _pick_tile(n_pad, candidates):
    for c in candidates:
        if n_pad % c == 0:
            return c
    return n_pad


def _pad_nodes(n):
    """Pad node count so row/k tiles never collapse to 128 on large graphs."""
    n128 = _round_up(n, LANE)
    if n128 <= 512:
        return n128
    return _round_up(n, 512)


def _vmem_limit(est_bytes):
    """Explicit scoped-VMEM limit: >= 32 MiB, capped below v7x's 64 MiB VMEM."""
    return int(min(max(2 * est_bytes, 32 * _MIB), 60 * _MIB))


# ---------------------------------------------------------------------------
# Small dense matmul kernel: hw = h @ [Wl | Wr]   (per-layer pre-multiply)
# ---------------------------------------------------------------------------
def _matmul_kernel(x_ref, w_ref, o_ref, acc_ref):
    k = pl.program_id(1)

    @pl.when(k == 0)
    def _():
        acc_ref[...] = jnp.zeros_like(acc_ref)

    acc_ref[...] += jnp.dot(x_ref[...], w_ref[...],
                            preferred_element_type=jnp.float32)

    @pl.when(k == pl.num_programs(1) - 1)
    def _():
        o_ref[...] = acc_ref[...].astype(o_ref.dtype)


def dense_matmul(x, w, *, out_dtype=jnp.bfloat16):
    """x: [M, K] bf16, w: [K, N] bf16 -> [M, N] (padded, lane-dense dims)."""
    m, kdim = x.shape
    _, n = w.shape
    tm = _pick_tile(m, (512, 256, 128))
    tk = _pick_tile(kdim, (512, 256, 128))
    est = (2 * tm * tk * 2 + 2 * tk * n * 2 + tm * n * 4
           + 2 * tm * n * jnp.dtype(out_dtype).itemsize)
    return pl.pallas_call(
        _matmul_kernel,
        out_shape=jax.ShapeDtypeStruct((m, n), out_dtype),
        grid_spec=pltpu.PrefetchScalarGridSpec(
            num_scalar_prefetch=0,
            grid=(m // tm, kdim // tk),
            in_specs=[
                pl.BlockSpec((tm, tk), lambda i, k: (i, k)),
                pl.BlockSpec((tk, n), lambda i, k: (k, 0)),
            ],
            out_specs=pl.BlockSpec((tm, n), lambda i, k: (i, 0)),
            scratch_shapes=[pltpu.VMEM((tm, n), jnp.float32)],
        ),
        compiler_params=pltpu.CompilerParams(
            dimension_semantics=("parallel", "arbitrary"),
            vmem_limit_bytes=_vmem_limit(est),
        ),
    )(x, w)


# ---------------------------------------------------------------------------
# SAGEConv layer kernel: out = inv_deg * (A01 @ hWl) + hWr + b   (+ReLU)
# ---------------------------------------------------------------------------
def _sage_layer_kernel(a_ref, xwl_ref, xwr_ref, inv_deg_ref, b_ref, o_ref,
                       acc_ref, *, apply_relu):
    k = pl.program_id(1)

    @pl.when(k == 0)
    def _():
        acc_ref[...] = jnp.zeros_like(acc_ref)

    # Un-normalized neighbor aggregation:  acc += A01[i, k] @ (x @ Wl)[k].
    # A01 is streamed from HBM as int8 (halves the dominant HBM traffic) and
    # cast to bf16 for the MXU; accumulation stays f32.
    acc_ref[...] += jnp.dot(a_ref[...].astype(xwl_ref.dtype), xwl_ref[...],
                            preferred_element_type=jnp.float32)

    @pl.when(k == pl.num_programs(1) - 1)
    def _():
        # Exact f32 epilogue: per-row mean scale, self term, bias, ReLU.
        out = (acc_ref[...] * inv_deg_ref[...]
               + xwr_ref[...].astype(jnp.float32)
               + b_ref[...])
        if apply_relu:
            out = jnp.maximum(out, 0.0)
        o_ref[...] = out.astype(o_ref.dtype)


def sage_layer(a01, xw, inv_deg, b, *, apply_relu, out_dtype):
    """One SAGEConv layer on padded operands.

    a01:     [N_pad, N_pad] int8 un-normalized adjacency counts A[dst, src].
    xw:      [N_pad, 2*Cout_pad] bf16; cols [0:C) = x@Wl, cols [C:2C) = x@Wr.
    inv_deg: [N_pad, 1] f32 per-destination 1/in_degree (0 for isolated nodes).
    b:       [1, Cout_pad] f32 bias (lin_l bias only, as in PyG SAGEConv).
    """
    n_pad = a01.shape[0]
    cout = xw.shape[1] // 2

    tm = _pick_tile(n_pad, (1024, 512, 256, 128))          # row tile ("parallel")
    tk = _pick_tile(n_pad, (2048, 1024, 512, 256, 128))    # contraction ("arbitrary")

    out_bytes = jnp.dtype(out_dtype).itemsize
    est = (2 * tm * tk * 1            # A int8, double-buffered
           + tm * tk * 2              # in-kernel bf16 copy of the A tile
           + 2 * tk * cout * 2        # x@Wl rows
           + 2 * tm * cout * 2        # x@Wr rows
           + 2 * tm * LANE * 4        # inv_deg (lane-padded)
           + 2 * 8 * cout * 4         # bias
           + tm * cout * 4            # f32 accumulator
           + 2 * tm * cout * out_bytes)

    kernel = functools.partial(_sage_layer_kernel, apply_relu=apply_relu)
    return pl.pallas_call(
        kernel,
        out_shape=jax.ShapeDtypeStruct((n_pad, cout), out_dtype),
        grid_spec=pltpu.PrefetchScalarGridSpec(
            num_scalar_prefetch=0,
            grid=(n_pad // tm, n_pad // tk),
            in_specs=[
                pl.BlockSpec((tm, tk), lambda i, k: (i, k)),     # A01 tile
                pl.BlockSpec((tk, cout), lambda i, k: (k, 0)),   # (x@Wl) rows (aggregation)
                pl.BlockSpec((tm, cout), lambda i, k: (i, 1)),   # (x@Wr) rows (self term)
                pl.BlockSpec((tm, 1), lambda i, k: (i, 0)),      # 1/deg for this row tile
                pl.BlockSpec((1, cout), lambda i, k: (0, 0)),    # bias
            ],
            out_specs=pl.BlockSpec((tm, cout), lambda i, k: (i, 0)),
            scratch_shapes=[pltpu.VMEM((tm, cout), jnp.float32)],
        ),
        compiler_params=pltpu.CompilerParams(
            dimension_semantics=("parallel", "arbitrary"),
            vmem_limit_bytes=_vmem_limit(est),
        ),
    )(a01, xw, xw, inv_deg, b)


# ---------------------------------------------------------------------------
# Graph / parameter preparation
# ---------------------------------------------------------------------------
def build_adjacency(edge_index, num_nodes, n_pad):
    """Un-normalized dense int8 adjacency counts + exact f32 inverse in-degrees.

    Single O(E) scatter directly into the padded int8 buffer (no N^2 f32
    passes); degrees via an O(E) segment sum over the edge list.
    """
    del num_nodes  # indices are already < num_nodes <= n_pad
    src = edge_index[0]
    dst = edge_index[1]
    ones_i8 = jnp.ones(src.shape, jnp.int8)
    ones_f32 = jnp.ones(dst.shape, jnp.float32)
    a01 = jnp.zeros((n_pad, n_pad), jnp.int8).at[dst, src].add(ones_i8)
    deg = jnp.zeros((n_pad,), jnp.float32).at[dst].add(ones_f32)
    inv_deg = jnp.where(deg > 0, 1.0 / jnp.maximum(deg, 1.0), 0.0)
    return a01, inv_deg.reshape(n_pad, 1)


def init_params(key, in_channels, hidden_channels, out_channels, num_layers=3):
    dims = [in_channels] + [hidden_channels] * (num_layers - 1) + [out_channels]
    params = []
    for li in range(num_layers):
        cin, cout = dims[li], dims[li + 1]
        key, k1, k2 = jax.random.split(key, 3)
        scale = 1.0 / jnp.sqrt(jnp.float32(cin))
        wl = jax.random.uniform(k1, (cin, cout), jnp.float32, -scale, scale)
        wr = jax.random.uniform(k2, (cin, cout), jnp.float32, -scale, scale)
        b = jnp.zeros((cout,), jnp.float32)
        params.append((wl, wr, b))
    return params


def _pad_params(params):
    """Pad channel dims to multiples of 128 and stack [Wl | Wr] along the output dim."""
    padded = []
    for wl, wr, b in params:
        cin, cout = wl.shape
        cin_p, cout_p = _round_up(cin, LANE), _round_up(cout, LANE)
        wcat = jnp.zeros((cin_p, 2 * cout_p), jnp.bfloat16)
        wcat = wcat.at[:cin, :cout].set(wl.astype(jnp.bfloat16))
        wcat = wcat.at[:cin, cout_p:cout_p + cout].set(wr.astype(jnp.bfloat16))
        b_p = jnp.zeros((1, cout_p), jnp.float32).at[0, :cout].set(b)
        padded.append((wcat, b_p))
    return padded


def graphsage_forward(x, edge_index, edge_attr, params):
    del edge_attr  # unused by the reference forward (conv(x, edge_index))
    n, cin = x.shape
    out_channels = params[-1][0].shape[1]
    n_pad = _pad_nodes(n)
    cin_pad = _round_up(cin, LANE)

    a01, inv_deg = build_adjacency(edge_index, n, n_pad)
    h = jnp.zeros((n_pad, cin_pad), jnp.bfloat16).at[:n, :cin].set(
        x.astype(jnp.bfloat16))

    padded_params = _pad_params(params)
    num_layers = len(padded_params)
    for li, (wcat, b) in enumerate(padded_params):
        last = li == num_layers - 1
        # Reassociated SAGEConv:
        #   hw  = h @ [Wl | Wr]                       (small Pallas matmul)
        #   out = inv_deg * (A01 @ hWl) + hWr + b     (+ReLU, fused layer kernel)
        hw = dense_matmul(h, wcat, out_dtype=jnp.bfloat16)
        h = sage_layer(a01, hw, inv_deg, b,
                       apply_relu=not last,
                       out_dtype=jnp.float32 if last else jnp.bfloat16)
        # dropout: eval mode -> identity

    return h[:n, :out_channels]


if __name__ == "__main__":
    key = jax.random.PRNGKey(0)
    num_nodes = 32
    num_edges = 64
    in_channels, hidden_channels, out_channels = 16, 32, 8

    k_x, k_e, k_attr, k_p = jax.random.split(key, 4)
    x = jax.random.normal(k_x, (num_nodes, in_channels), jnp.float32)
    edge_index = jax.random.randint(k_e, (2, num_edges), 0, num_nodes, jnp.int32)
    edge_attr = jax.random.normal(k_attr, (num_edges, 4), jnp.float32)

    params = init_params(k_p, in_channels, hidden_channels, out_channels, num_layers=3)

    fwd = jax.jit(graphsage_forward)
    out = fwd(x, edge_index, edge_attr, params)
    jax.block_until_ready(out)
    assert out.shape == (num_nodes, out_channels)
    assert bool(jnp.all(jnp.isfinite(out)))
    print("KERNEL_OK")
</pallas_src>

<mosaic_0001>
module attributes {stable_mosaic.version = 11 : i64} {
  func.func private @main(%arg0: i32) attributes {dimension_semantics = [#tpu.dimension_semantics<core_parallel>], iteration_bounds = array<i64: 2>, tpu.core_type = #tpu.core_type<sc_scalar_subcore>, window_params = []} {
    return
  }
}

module attributes {stable_mosaic.version = 11 : i64} {
  func.func private @main(%arg0: i32) attributes {dimension_semantics = [#tpu.dimension_semantics<core_parallel>], iteration_bounds = array<i64: 2>, tpu.core_type = #tpu.core_type<sc_scalar_subcore>, window_params = []} {
    return
  }
}

module attributes {stable_mosaic.version = 11 : i64} {
  func.func @_matmul_kernel(%arg0: i32, %arg1: i32, %arg2: memref<128x128xbf16, #tpu.memory_space<vmem>>, %arg3: memref<128x256xbf16, #tpu.memory_space<vmem>>, %arg4: memref<128x256xbf16, #tpu.memory_space<vmem>>, %arg5: memref<128x256xf32, #tpu.memory_space<vmem>>) attributes {dimension_semantics = [#tpu.dimension_semantics<parallel>, #tpu.dimension_semantics<arbitrary>], iteration_bounds = array<i64: 1, 1>, scalar_prefetch = 0 : i64, scratch_operands = 1 : i64, tpu.core_type = #tpu.core_type<tc>, window_params = [{transform_indices = @transform_0, window_bounds = array<i64: 128, 128>}, {transform_indices = @transform_1, window_bounds = array<i64: 128, 256>}, {transform_indices = @transform_2, window_bounds = array<i64: 128, 256>}]} {
    %c0_i32 = arith.constant 0 : i32
    %0 = arith.cmpi eq, %arg1, %c0_i32 : i32
    %1 = arith.extui %0 : i1 to i32
    %c0_i32_0 = arith.constant 0 : i32
    %2 = arith.cmpi ne, %1, %c0_i32_0 : i32
    scf.if %2 {
      %cst_10 = arith.constant 0.000000e+00 : f32
      %12 = vector.broadcast %cst_10 : f32 to vector<128x256xf32>
      %c0_11 = arith.constant 0 : index
      %c0_12 = arith.constant 0 : index
      %13 = vector.load %arg5[%c0_11, %c0_12] : memref<128x256xf32, #tpu.memory_space<vmem>>, vector<128x256xf32>
      tpu.vector_store %arg5[%c0_11, %c0_12], %12 {strides = array<i32>} : memref<128x256xf32, #tpu.memory_space<vmem>>, vector<128x256xf32>,
    } else {
    }
    %c0 = arith.constant 0 : index
    %c0_1 = arith.constant 0 : index
    %3 = vector.load %arg5[%c0, %c0_1] : memref<128x256xf32, #tpu.memory_space<vmem>>, vector<128x256xf32>
    %c0_2 = arith.constant 0 : index
    %c0_3 = arith.constant 0 : index
    %4 = vector.load %arg2[%c0_2, %c0_3] : memref<128x128xbf16, #tpu.memory_space<vmem>>, vector<128x128xbf16>
    %c0_4 = arith.constant 0 : index
    %c0_5 = arith.constant 0 : index
    %5 = vector.load %arg3[%c0_4, %c0_5] : memref<128x256xbf16, #tpu.memory_space<vmem>>, vector<128x256xbf16>
    %cst = arith.constant dense<0.000000e+00> : vector<128x256xf32>
    %6 = tpu.matmul %4, %5, %cst {dimension_numbers = #tpu.dot_dimension_numbers<[1], [0], [0], [1], [0, 0, 1, 1], [], []>} : vector<128x128xbf16>, vector<128x256xbf16>, vector<128x256xf32> -> vector<128x256xf32>
    %7 = arith.addf %3, %6 : vector<128x256xf32>
    %c0_6 = arith.constant 0 : index
    %c0_7 = arith.constant 0 : index
    %8 = vector.load %arg5[%c0_6, %c0_7] : memref<128x256xf32, #tpu.memory_space<vmem>>, vector<128x256xf32>
    tpu.vector_store %arg5[%c0_6, %c0_7], %7 {strides = array<i32>} : memref<128x256xf32, #tpu.memory_space<vmem>>, vector<128x256xf32>,
    %c0_i32_8 = arith.constant 0 : i32
    %9 = arith.cmpi eq, %arg1, %c0_i32_8 : i32
    %10 = arith.extui %9 : i1 to i32
    %c0_i32_9 = arith.constant 0 : i32
    %11 = arith.cmpi ne, %10, %c0_i32_9 : i32
    scf.if %11 {
      %c0_10 = arith.constant 0 : index
      %c0_11 = arith.constant 0 : index
      %12 = vector.load %arg5[%c0_10, %c0_11] : memref<128x256xf32, #tpu.memory_space<vmem>>, vector<128x256xf32>
      %13 = arith.truncf %12 : vector<128x256xf32> to vector<128x256xbf16>
      %c0_12 = arith.constant 0 : index
      %c0_13 = arith.constant 0 : index
      %14 = vector.load %arg4[%c0_12, %c0_13] : memref<128x256xbf16, #tpu.memory_space<vmem>>, vector<128x256xbf16>
      tpu.vector_store %arg4[%c0_12, %c0_13], %13 {strides = array<i32>} : memref<128x256xbf16, #tpu.memory_space<vmem>>, vector<128x256xbf16>,
    } else {
    }
    return
  }
  func.func @transform_0(%arg0: i32, %arg1: i32) -> (i32, i32) {
    %c0_i32 = arith.constant 0 : i32
    return %arg0, %arg1 : i32, i32
  }
  func.func @transform_1(%arg0: i32, %arg1: i32) -> (i32, i32) {
    %c0_i32 = arith.constant 0 : i32
    %c0_i32_0 = arith.constant 0 : i32
    return %arg1, %c0_i32 : i32, i32
  }
  func.func @transform_2(%arg0: i32, %arg1: i32) -> (i32, i32) {
    %c0_i32 = arith.constant 0 : i32
    %c0_i32_0 = arith.constant 0 : i32
    return %arg0, %c0_i32 : i32, i32
  }
}

module attributes {stable_mosaic.version = 11 : i64} {
  func.func @_sage_layer_kernel(%arg0: i32, %arg1: i32, %arg2: memref<128x128xi8, #tpu.memory_space<vmem>>, %arg3: memref<128x128xbf16, #tpu.memory_space<vmem>>, %arg4: memref<128x128xbf16, #tpu.memory_space<vmem>>, %arg5: memref<128x1xf32, #tpu.memory_space<vmem>>, %arg6: memref<1x128xf32, #tpu.memory_space<vmem>>, %arg7: memref<128x128xbf16, #tpu.memory_space<vmem>>, %arg8: memref<128x128xf32, #tpu.memory_space<vmem>>) attributes {dimension_semantics = [#tpu.dimension_semantics<parallel>, #tpu.dimension_semantics<arbitrary>], iteration_bounds = array<i64: 1, 1>, scalar_prefetch = 0 : i64, scratch_operands = 1 : i64, tpu.core_type = #tpu.core_type<tc>, window_params = [{transform_indices = @transform_0, window_bounds = array<i64: 128, 128>}, {transform_indices = @transform_1, window_bounds = array<i64: 128, 128>}, {transform_indices = @transform_2, window_bounds = array<i64: 128, 128>}, {transform_indices = @transform_3, window_bounds = array<i64: 128, 1>}, {pipeline_mode = #tpu.pipeline_mode<synchronous>, transform_indices = @transform_4, window_bounds = array<i64: 1, 128>}, {transform_indices = @transform_5, window_bounds = array<i64: 128, 128>}]} {
    %c0_i32 = arith.constant 0 : i32
    %0 = arith.cmpi eq, %arg1, %c0_i32 : i32
    %1 = arith.extui %0 : i1 to i32
    %c0_i32_0 = arith.constant 0 : i32
    %2 = arith.cmpi ne, %1, %c0_i32_0 : i32
    scf.if %2 {
      %cst_10 = arith.constant 0.000000e+00 : f32
      %13 = vector.broadcast %cst_10 : f32 to vector<128x128xf32>
      %c0_11 = arith.constant 0 : index
      %c0_12 = arith.constant 0 : index
      %14 = vector.load %arg8[%c0_11, %c0_12] : memref<128x128xf32, #tpu.memory_space<vmem>>, vector<128x128xf32>
      tpu.vector_store %arg8[%c0_11, %c0_12], %13 {strides = array<i32>} : memref<128x128xf32, #tpu.memory_space<vmem>>, vector<128x128xf32>,
    } else {
    }
    %c0 = arith.constant 0 : index
    %c0_1 = arith.constant 0 : index
    %3 = vector.load %arg8[%c0, %c0_1] : memref<128x128xf32, #tpu.memory_space<vmem>>, vector<128x128xf32>
    %c0_2 = arith.constant 0 : index
    %c0_3 = arith.constant 0 : index
    %4 = vector.load %arg2[%c0_2, %c0_3] : memref<128x128xi8, #tpu.memory_space<vmem>>, vector<128x128xi8>
    %5 = arith.sitofp %4 : vector<128x128xi8> to vector<128x128xbf16>
    %c0_4 = arith.constant 0 : index
    %c0_5 = arith.constant 0 : index
    %6 = vector.load %arg3[%c0_4, %c0_5] : memref<128x128xbf16, #tpu.memory_space<vmem>>, vector<128x128xbf16>
    %cst = arith.constant dense<0.000000e+00> : vector<128x128xf32>
    %7 = tpu.matmul %5, %6, %cst {dimension_numbers = #tpu.dot_dimension_numbers<[1], [0], [0], [1], [0, 0, 1, 1], [], []>} : vector<128x128xbf16>, vector<128x128xbf16>, vector<128x128xf32> -> vector<128x128xf32>
    %8 = arith.addf %3, %7 : vector<128x128xf32>
    %c0_6 = arith.constant 0 : index
    %c0_7 = arith.constant 0 : index
    %9 = vector.load %arg8[%c0_6, %c0_7] : memref<128x128xf32, #tpu.memory_space<vmem>>, vector<128x128xf32>
    tpu.vector_store %arg8[%c0_6, %c0_7], %8 {strides = array<i32>} : memref<128x128xf32, #tpu.memory_space<vmem>>, vector<128x128xf32>,
    %c0_i32_8 = arith.constant 0 : i32
    %10 = arith.cmpi eq, %arg1, %c0_i32_8 : i32
    %11 = arith.extui %10 : i1 to i32
    %c0_i32_9 = arith.constant 0 : i32
    %12 = arith.cmpi ne, %11, %c0_i32_9 : i32
    scf.if %12 {
      %c0_10 = arith.constant 0 : index
      %c0_11 = arith.constant 0 : index
      %13 = vector.load %arg8[%c0_10, %c0_11] : memref<128x128xf32, #tpu.memory_space<vmem>>, vector<128x128xf32>
      %c0_12 = arith.constant 0 : index
      %c0_13 = arith.constant 0 : index
      %14 = vector.load %arg5[%c0_12, %c0_13] : memref<128x1xf32, #tpu.memory_space<vmem>>, vector<128x1xf32>
      %15 = vector.broadcast %14 : vector<128x1xf32> to vector<128x128xf32>
      %16 = arith.mulf %13, %15 : vector<128x128xf32>
      %c0_14 = arith.constant 0 : index
      %c0_15 = arith.constant 0 : index
      %17 = vector.load %arg4[%c0_14, %c0_15] : memref<128x128xbf16, #tpu.memory_space<vmem>>, vector<128x128xbf16>
      %18 = arith.extf %17 : vector<128x128xbf16> to vector<128x128xf32>
      %19 = arith.addf %16, %18 : vector<128x128xf32>
      %c0_16 = arith.constant 0 : index
      %c0_17 = arith.constant 0 : index
      %20 = vector.load %arg6[%c0_16, %c0_17] : memref<1x128xf32, #tpu.memory_space<vmem>>, vector<1x128xf32>
      %21 = vector.broadcast %20 : vector<1x128xf32> to vector<128x128xf32>
      %22 = arith.addf %19, %21 : vector<128x128xf32>
      %cst_18 = arith.constant 0.000000e+00 : f32
      %23 = vector.broadcast %cst_18 : f32 to vector<128x128xf32>
      %24 = arith.maximumf %22, %23 : vector<128x128xf32>
      %25 = arith.truncf %24 : vector<128x128xf32> to vector<128x128xbf16>
      %c0_19 = arith.constant 0 : index
      %c0_20 = arith.constant 0 : index
      %26 = vector.load %arg7[%c0_19, %c0_20] : memref<128x128xbf16, #tpu.memory_space<vmem>>, vector<128x128xbf16>
      tpu.vector_store %arg7[%c0_19, %c0_20], %25 {strides = array<i32>} : memref<128x128xbf16, #tpu.memory_space<vmem>>, vector<128x128xbf16>,
    } else {
    }
    return
  }
  func.func @transform_0(%arg0: i32, %arg1: i32) -> (i32, i32) {
    %c0_i32 = arith.constant 0 : i32
    return %arg0, %arg1 : i32, i32
  }
  func.func @transform_1(%arg0: i32, %arg1: i32) -> (i32, i32) {
    %c0_i32 = arith.constant 0 : i32
    %c0_i32_0 = arith.constant 0 : i32
    return %arg1, %c0_i32 : i32, i32
  }
  func.func @transform_2(%arg0: i32, %arg1: i32) -> (i32, i32) {
    %c1_i32 = arith.constant 1 : i32
    %c0_i32 = arith.constant 0 : i32
    return %arg0, %c1_i32 : i32, i32
  }
  func.func @transform_3(%arg0: i32, %arg1: i32) -> (i32, i32) {
    %c0_i32 = arith.constant 0 : i32
    %c0_i32_0 = arith.constant 0 : i32
    return %arg0, %c0_i32 : i32, i32
  }
  func.func @transform_4(%arg0: i32, %arg1: i32) -> (i32, i32) {
    %c0_i32 = arith.constant 0 : i32
    %c0_i32_0 = arith.constant 0 : i32
    %c0_i32_1 = arith.constant 0 : i32
    return %c0_i32, %c0_i32_0 : i32, i32
  }
  func.func @transform_5(%arg0: i32, %arg1: i32) -> (i32, i32) {
    %c0_i32 = arith.constant 0 : i32
    %c0_i32_0 = arith.constant 0 : i32
    return %arg0, %c0_i32 : i32, i32
  }
}

module attributes {stable_mosaic.version = 11 : i64} {
  func.func @_sage_layer_kernel(%arg0: i32, %arg1: i32, %arg2: memref<128x128xi8, #tpu.memory_space<vmem>>, %arg3: memref<128x128xbf16, #tpu.memory_space<vmem>>, %arg4: memref<128x128xbf16, #tpu.memory_space<vmem>>, %arg5: memref<128x1xf32, #tpu.memory_space<vmem>>, %arg6: memref<1x128xf32, #tpu.memory_space<vmem>>, %arg7: memref<128x128xf32, #tpu.memory_space<vmem>>, %arg8: memref<128x128xf32, #tpu.memory_space<vmem>>) attributes {dimension_semantics = [#tpu.dimension_semantics<parallel>, #tpu.dimension_semantics<arbitrary>], iteration_bounds = array<i64: 1, 1>, scalar_prefetch = 0 : i64, scratch_operands = 1 : i64, tpu.core_type = #tpu.core_type<tc>, window_params = [{transform_indices = @transform_0, window_bounds = array<i64: 128, 128>}, {transform_indices = @transform_1, window_bounds = array<i64: 128, 128>}, {transform_indices = @transform_2, window_bounds = array<i64: 128, 128>}, {transform_indices = @transform_3, window_bounds = array<i64: 128, 1>}, {pipeline_mode = #tpu.pipeline_mode<synchronous>, transform_indices = @transform_4, window_bounds = array<i64: 1, 128>}, {transform_indices = @transform_5, window_bounds = array<i64: 128, 128>}]} {
    %c0_i32 = arith.constant 0 : i32
    %0 = arith.cmpi eq, %arg1, %c0_i32 : i32
    %1 = arith.extui %0 : i1 to i32
    %c0_i32_0 = arith.constant 0 : i32
    %2 = arith.cmpi ne, %1, %c0_i32_0 : i32
    scf.if %2 {
      %cst_10 = arith.constant 0.000000e+00 : f32
      %13 = vector.broadcast %cst_10 : f32 to vector<128x128xf32>
      %c0_11 = arith.constant 0 : index
      %c0_12 = arith.constant 0 : index
      %14 = vector.load %arg8[%c0_11, %c0_12] : memref<128x128xf32, #tpu.memory_space<vmem>>, vector<128x128xf32>
      tpu.vector_store %arg8[%c0_11, %c0_12], %13 {strides = array<i32>} : memref<128x128xf32, #tpu.memory_space<vmem>>, vector<128x128xf32>,
    } else {
    }
    %c0 = arith.constant 0 : index
    %c0_1 = arith.constant 0 : index
    %3 = vector.load %arg8[%c0, %c0_1] : memref<128x128xf32, #tpu.memory_space<vmem>>, vector<128x128xf32>
    %c0_2 = arith.constant 0 : index
    %c0_3 = arith.constant 0 : index
    %4 = vector.load %arg2[%c0_2, %c0_3] : memref<128x128xi8, #tpu.memory_space<vmem>>, vector<128x128xi8>
    %5 = arith.sitofp %4 : vector<128x128xi8> to vector<128x128xbf16>
    %c0_4 = arith.constant 0 : index
    %c0_5 = arith.constant 0 : index
    %6 = vector.load %arg3[%c0_4, %c0_5] : memref<128x128xbf16, #tpu.memory_space<vmem>>, vector<128x128xbf16>
    %cst = arith.constant dense<0.000000e+00> : vector<128x128xf32>
    %7 = tpu.matmul %5, %6, %cst {dimension_numbers = #tpu.dot_dimension_numbers<[1], [0], [0], [1], [0, 0, 1, 1], [], []>} : vector<128x128xbf16>, vector<128x128xbf16>, vector<128x128xf32> -> vector<128x128xf32>
    %8 = arith.addf %3, %7 : vector<128x128xf32>
    %c0_6 = arith.constant 0 : index
    %c0_7 = arith.constant 0 : index
    %9 = vector.load %arg8[%c0_6, %c0_7] : memref<128x128xf32, #tpu.memory_space<vmem>>, vector<128x128xf32>
    tpu.vector_store %arg8[%c0_6, %c0_7], %8 {strides = array<i32>} : memref<128x128xf32, #tpu.memory_space<vmem>>, vector<128x128xf32>,
    %c0_i32_8 = arith.constant 0 : i32
    %10 = arith.cmpi eq, %arg1, %c0_i32_8 : i32
    %11 = arith.extui %10 : i1 to i32
    %c0_i32_9 = arith.constant 0 : i32
    %12 = arith.cmpi ne, %11, %c0_i32_9 : i32
    scf.if %12 {
      %c0_10 = arith.constant 0 : index
      %c0_11 = arith.constant 0 : index
      %13 = vector.load %arg8[%c0_10, %c0_11] : memref<128x128xf32, #tpu.memory_space<vmem>>, vector<128x128xf32>
      %c0_12 = arith.constant 0 : index
      %c0_13 = arith.constant 0 : index
      %14 = vector.load %arg5[%c0_12, %c0_13] : memref<128x1xf32, #tpu.memory_space<vmem>>, vector<128x1xf32>
      %15 = vector.broadcast %14 : vector<128x1xf32> to vector<128x128xf32>
      %16 = arith.mulf %13, %15 : vector<128x128xf32>
      %c0_14 = arith.constant 0 : index
      %c0_15 = arith.constant 0 : index
      %17 = vector.load %arg4[%c0_14, %c0_15] : memref<128x128xbf16, #tpu.memory_space<vmem>>, vector<128x128xbf16>
      %18 = arith.extf %17 : vector<128x128xbf16> to vector<128x128xf32>
      %19 = arith.addf %16, %18 : vector<128x128xf32>
      %c0_16 = arith.constant 0 : index
      %c0_17 = arith.constant 0 : index
      %20 = vector.load %arg6[%c0_16, %c0_17] : memref<1x128xf32, #tpu.memory_space<vmem>>, vector<1x128xf32>
      %21 = vector.broadcast %20 : vector<1x128xf32> to vector<128x128xf32>
      %22 = arith.addf %19, %21 : vector<128x128xf32>
      %c0_18 = arith.constant 0 : index
      %c0_19 = arith.constant 0 : index
      %23 = vector.load %arg7[%c0_18, %c0_19] : memref<128x128xf32, #tpu.memory_space<vmem>>, vector<128x128xf32>
      tpu.vector_store %arg7[%c0_18, %c0_19], %22 {strides = array<i32>} : memref<128x128xf32, #tpu.memory_space<vmem>>, vector<128x128xf32>,
    } else {
    }
    return
  }
  func.func @transform_0(%arg0: i32, %arg1: i32) -> (i32, i32) {
    %c0_i32 = arith.constant 0 : i32
    return %arg0, %arg1 : i32, i32
  }
  func.func @transform_1(%arg0: i32, %arg1: i32) -> (i32, i32) {
    %c0_i32 = arith.constant 0 : i32
    %c0_i32_0 = arith.constant 0 : i32
    return %arg1, %c0_i32 : i32, i32
  }
  func.func @transform_2(%arg0: i32, %arg1: i32) -> (i32, i32) {
    %c1_i32 = arith.constant 1 : i32
    %c0_i32 = arith.constant 0 : i32
    return %arg0, %c1_i32 : i32, i32
  }
  func.func @transform_3(%arg0: i32, %arg1: i32) -> (i32, i32) {
    %c0_i32 = arith.constant 0 : i32
    %c0_i32_0 = arith.constant 0 : i32
    return %arg0, %c0_i32 : i32, i32
  }
  func.func @transform_4(%arg0: i32, %arg1: i32) -> (i32, i32) {
    %c0_i32 = arith.constant 0 : i32
    %c0_i32_0 = arith.constant 0 : i32
    %c0_i32_1 = arith.constant 0 : i32
    return %c0_i32, %c0_i32_0 : i32, i32
  }
  func.func @transform_5(%arg0: i32, %arg1: i32) -> (i32, i32) {
    %c0_i32 = arith.constant 0 : i32
    %c0_i32_0 = arith.constant 0 : i32
    return %arg0, %c0_i32 : i32, i32
  }
}

</mosaic_0001>

<bundles_post_ra>
// kernel: graphsage_forward.6
= control target key start
LH: loop header
LB: loop body
LE: loop exit
PB: predicated region body
PF: predicated region fallthrough
CT: control target
= control target key end

     0   :  { %v673_v1 = vmov 0   ;;  %s817_s1 = inlined_call_operand.vmem [shape: bf16[128,256], index: 1, kind: input, shape index: {}]   ;;  %s818_s0 = inlined_call_operand.vmem [shape: bf16[128,128], index: 0, kind: input, shape index: {}]   ;;  %s819_s2 = inlined_call_operand.vmem [shape: bf16[128,256], index: 2, kind: output, shape index: {}]  }
   0x1   :  { %v641_v0 = vld [vmem:[%s817_s1 + $0x4] ss:$8 sps:$4 sm:$0xff]   ;;  %272 = vmatprep.mubr.bf16.mxu0 %v673_v1  ;;  %312 = vmatprep.mubr.bf16.mxu1 %v673_v1  ;;  %v643_v2 = vld [vmem:[%s817_s1] ss:$8 sps:$4 sm:$0xff]   ;;  %v644_v3 = vld [vmem:[%s817_s1 + $0x14] ss:$8 sps:$4 sm:$0xff]  }
   0x2   :  { %240 = vmatprep.subr.bf16.mxu0 %v641_v0  ;;  %624 = vmatprep.subr.bf16.mxu1 %v641_v0  ;;  %v646_v4 = vld [vmem:[%s817_s1 + $0x10] ss:$8 sps:$4 sm:$0xff]   ;;  %v647_v5 = vld [vmem:[%s817_s1 + $0x24] ss:$8 sps:$4 sm:$0xff]   ;;  %v649_v6 = vld [vmem:[%s817_s1 + $0x20] ss:$8 sps:$4 sm:$0xff]  }
   0x3   :  { %241 = vmatpush1.bf16.msra.mxu0 %v643_v2  ;;  %632 = vmatpush1.bf16.msra.mxu1 %v643_v2  ;;  %v650_v7 = vld [vmem:[%s817_s1 + $0x34] ss:$8 sps:$4 sm:$0xff]   ;;  %v652_v8 = vld [vmem:[%s817_s1 + $0x30] ss:$8 sps:$4 sm:$0xff]   ;;  %v653_v9 = vld [vmem:[%s817_s1 + $0x44] ss:$8 sps:$4 sm:$0xff]  }
   0x4   :  { %242 = vmatprep.subr.bf16.mxu0 %v644_v3  ;;  %625 = vmatprep.subr.bf16.mxu1 %v644_v3  ;;  %v655_v10 = vld [vmem:[%s817_s1 + $0x40] ss:$8 sps:$4 sm:$0xff]   ;;  %v656_v11 = vld [vmem:[%s817_s1 + $0x54] ss:$8 sps:$4 sm:$0xff]   ;;  %v658_v12 = vld [vmem:[%s817_s1 + $0x50] ss:$8 sps:$4 sm:$0xff]  }
   0x5   :  { %v659_v13 = vld [vmem:[%s817_s1 + $0x64] ss:$8 sps:$4 sm:$0xff]   ;;  %v661_v14 = vld [vmem:[%s817_s1 + $0x60] ss:$8 sps:$4 sm:$0xff]   ;;  %v662_v15 = vld [vmem:[%s817_s1 + $0x74] ss:$8 sps:$4 sm:$0xff]  }
   0x6   :  { %v664_v16 = vld [vmem:[%s817_s1 + $0x70] ss:$8 sps:$4 sm:$0xff]   ;;  %v665_v17 = vld [vmem:[%s818_s0] sm:$0xff]   ;;  %v667_v19 = vld [vmem:[%s818_s0 + $0x8] sm:$0xff]  }
   0x7   :  { %243 = vmatpush1.bf16.msra.mxu0 %v646_v4  ;;  %633 = vmatpush1.bf16.msra.mxu1 %v646_v4  ;;  %v666_v18 = vld [vmem:[%s818_s0 + $0x20] sm:$0xff]   ;;  %v668_v20 = vld [vmem:[%s818_s0 + $0x28] sm:$0xff]   ;;  %v669_v21 = vld [vmem:[%s818_s0 + $0x10] sm:$0xff]  }
   0x8   :  { %244 = vmatprep.subr.bf16.mxu0 %v647_v5  ;;  %626 = vmatprep.subr.bf16.mxu1 %v647_v5  ;;  %v670_v22 = vld [vmem:[%s818_s0 + $0x30] sm:$0xff]   ;;  %v671_v23 = vld [vmem:[%s818_s0 + $0x18] sm:$0xff]  }
   0x9   :  { %v672_v24 = vld [vmem:[%s818_s0 + $0x38] sm:$0xff]  }
   0xb   :  { %245 = vmatpush1.bf16.msra.mxu0 %v649_v6  ;;  %634 = vmatpush1.bf16.msra.mxu1 %v649_v6 }
   0xc   :  { %246 = vmatprep.subr.bf16.mxu0 %v650_v7  ;;  %627 = vmatprep.subr.bf16.mxu1 %v650_v7 }
   0xf   :  { %247 = vmatpush1.bf16.msra.mxu0 %v652_v8  ;;  %635 = vmatpush1.bf16.msra.mxu1 %v652_v8 }
  0x10   :  { %248 = vmatprep.subr.bf16.mxu0 %v653_v9  ;;  %628 = vmatprep.subr.bf16.mxu1 %v653_v9 }
  0x13   :  { %249 = vmatpush1.bf16.msra.mxu0 %v655_v10  ;;  %636 = vmatpush1.bf16.msra.mxu1 %v655_v10 }
  0x14   :  { %250 = vmatprep.subr.bf16.mxu0 %v656_v11  ;;  %629 = vmatprep.subr.bf16.mxu1 %v656_v11 }
  0x17   :  { %251 = vmatpush1.bf16.msra.mxu0 %v658_v12  ;;  %637 = vmatpush1.bf16.msra.mxu1 %v658_v12 }
  0x18   :  { %252 = vmatprep.subr.bf16.mxu0 %v659_v13  ;;  %630 = vmatprep.subr.bf16.mxu1 %v659_v13 }
  0x1b   :  { %253 = vmatpush1.bf16.msra.mxu0 %v661_v14  ;;  %638 = vmatpush1.bf16.msra.mxu1 %v661_v14 }
  0x1c   :  { %254 = vmatprep.subr.bf16.mxu0 %v662_v15  ;;  %631 = vmatprep.subr.bf16.mxu1 %v662_v15 }
  0x1f   :  { %255 = vmatpush1.bf16.msra.mxu0 %v664_v16  ;;  %639 = vmatpush1.bf16.msra.mxu1 %v664_v16 }
  0x22   :  { %273 = vmatmul.mubr.bf16.vlgmr.msra.gmra.mrb[0].mxu0 %v665_v17  ;;  %313 = vmatmul.mubr.bf16.vlgmr.msra.gmra.mrb[0].mxu1 %v666_v18 }
  0x23   :  { %282 = vmatprep.mubr.bf16.mxu0 %v673_v1  ;;  %322 = vmatprep.mubr.bf16.mxu1 %v673_v1 }
  0x2a   :  { %283 = vmatmul.mubr.bf16.gmra.mrb[4].mxu0 %v667_v19  ;;  %323 = vmatmul.mubr.bf16.gmra.mrb[4].mxu1 %v668_v20 }
  0x2b   :  { %292 = vmatprep.mubr.bf16.mxu0 %v673_v1  ;;  %332 = vmatprep.mubr.bf16.mxu1 %v673_v1 }
  0x32   :  { %293 = vmatmul.mubr.bf16.gmra.mrb[8].mxu0 %v669_v21  ;;  %333 = vmatmul.mubr.bf16.gmra.mrb[8].mxu1 %v670_v22 }
  0x33   :  { %302 = vmatprep.mubr.bf16.mxu0 %v673_v1  ;;  %342 = vmatprep.mubr.bf16.mxu1 %v673_v1 }
  0x3a   :  { %303 = vmatmul.mubr.bf16.gmra.mrb[12].mxu0 %v671_v23  ;;  %343 = vmatmul.mubr.bf16.gmra.mrb[12].mxu1 %v672_v24 }
  0xf5   :  { %v274_v25 = vpop.f32.mrb[0].mxu0  ;;  %v314_v26 = vpop.f32.mrb[0].mxu1 }
  0xf6   :  { %v276_v27 = vpop.f32.mrb[1].mxu0  ;;  %v316_v28 = vpop.f32.mrb[1].mxu1 }
  0xf7   :  { %v608_v29 = vpack.c.bf16 %v276_v27, %v274_v25  ;;  %v616_v30 = vpack.c.bf16 %v316_v28, %v314_v26  ;;  %v278_v31 = vpop.f32.mrb[2].mxu0  ;;  %v318_v32 = vpop.f32.mrb[2].mxu1 }
  0xf8   :  { %v280_v33 = vpop.f32.mrb[3].mxu0  ;;  %v320_v34 = vpop.f32.mrb[3].mxu1 }
  0xf9   :  { %548 = vst [vmem:[%s819_s2] sm:$0xff] %v608_v29  ;;  %556 = vst [vmem:[%s819_s2 + $0x40] sm:$0xff] %v616_v30  ;;  %v609_v35 = vpack.c.bf16 %v280_v33, %v278_v31  ;;  %v617_v36 = vpack.c.bf16 %v320_v34, %v318_v32 }
  0xfb   :  { %549 = vst [vmem:[%s819_s2 + $0x8] sm:$0xff] %v609_v35  ;;  %557 = vst [vmem:[%s819_s2 + $0x48] sm:$0xff] %v617_v36 }
  0xfd   :  { %v284_v37 = vpop.f32.mrb[4].mxu0  ;;  %v324_v38 = vpop.f32.mrb[4].mxu1 }
  0xfe   :  { %v286_v39 = vpop.f32.mrb[5].mxu0  ;;  %v326_v40 = vpop.f32.mrb[5].mxu1 }
  0xff   :  { %v610_v41 = vpack.c.bf16 %v286_v39, %v284_v37  ;;  %v618_v42 = vpack.c.bf16 %v326_v40, %v324_v38  ;;  %v288_v43 = vpop.f32.mrb[6].mxu0  ;;  %v328_v44 = vpop.f32.mrb[6].mxu1 }
 0x100   :  { %v290_v45 = vpop.f32.mrb[7].mxu0  ;;  %v330_v46 = vpop.f32.mrb[7].mxu1 }
 0x101   :  { %550 = vst [vmem:[%s819_s2 + $0x10] sm:$0xff] %v610_v41  ;;  %558 = vst [vmem:[%s819_s2 + $0x50] sm:$0xff] %v618_v42  ;;  %v611_v47 = vpack.c.bf16 %v290_v45, %v288_v43  ;;  %v619_v48 = vpack.c.bf16 %v330_v46, %v328_v44 }
 0x103   :  { %551 = vst [vmem:[%s819_s2 + $0x18] sm:$0xff] %v611_v47  ;;  %559 = vst [vmem:[%s819_s2 + $0x58] sm:$0xff] %v619_v48 }
 0x105   :  { %v294_v49 = vpop.f32.mrb[8].mxu0  ;;  %v334_v50 = vpop.f32.mrb[8].mxu1 }
 0x106   :  { %v296_v51 = vpop.f32.mrb[9].mxu0  ;;  %v336_v52 = vpop.f32.mrb[9].mxu1 }
 0x107   :  { %v612_v53 = vpack.c.bf16 %v296_v51, %v294_v49  ;;  %v620_v54 = vpack.c.bf16 %v336_v52, %v334_v50  ;;  %v298_v55 = vpop.f32.mrb[10].mxu0  ;;  %v338_v56 = vpop.f32.mrb[10].mxu1 }
 0x108   :  { %v300_v57 = vpop.f32.mrb[11].mxu0  ;;  %v340_v58 = vpop.f32.mrb[11].mxu1 }
 0x109   :  { %552 = vst [vmem:[%s819_s2 + $0x20] sm:$0xff] %v612_v53  ;;  %560 = vst [vmem:[%s819_s2 + $0x60] sm:$0xff] %v620_v54  ;;  %v613_v59 = vpack.c.bf16 %v300_v57, %v298_v55  ;;  %v621_v60 = vpack.c.bf16 %v340_v58, %v338_v56 }
 0x10b   :  { %553 = vst [vmem:[%s819_s2 + $0x28] sm:$0xff] %v613_v59  ;;  %561 = vst [vmem:[%s819_s2 + $0x68] sm:$0xff] %v621_v60 }
 0x10d   :  { %v304_v61 = vpop.f32.mrb[12].mxu0  ;;  %v344_v62 = vpop.f32.mrb[12].mxu1 }
 0x10e   :  { %v306_v63 = vpop.f32.mrb[13].mxu0  ;;  %v346_v0 = vpop.f32.mrb[13].mxu1 }
 0x10f   :  { %v614_v1 = vpack.c.bf16 %v306_v63, %v304_v61  ;;  %v622_v2 = vpack.c.bf16 %v346_v0, %v344_v62  ;;  %v308_v3 = vpop.f32.mrb[14].mxu0  ;;  %v348_v4 = vpop.f32.mrb[14].mxu1 }
 0x110   :  { %v310_v5 = vpop.f32.mrb[15].mxu0  ;;  %v350_v6 = vpop.f32.mrb[15].mxu1 }
 0x111   :  { %554 = vst [vmem:[%s819_s2 + $0x30] sm:$0xff] %v614_v1  ;;  %562 = vst [vmem:[%s819_s2 + $0x70] sm:$0xff] %v622_v2  ;;  %v615_v7 = vpack.c.bf16 %v310_v5, %v308_v3  ;;  %v623_v8 = vpack.c.bf16 %v350_v6, %v348_v4 }
 0x113   :  { %555 = vst [vmem:[%s819_s2 + $0x38] sm:$0xff] %v615_v7  ;;  %563 = vst [vmem:[%s819_s2 + $0x78] sm:$0xff] %v623_v8 }

// kernel: graphsage_forward.7
= control target key start
LH: loop header
LB: loop body
LE: loop exit
PB: predicated region body
PF: predicated region fallthrough
CT: control target
= control target key end

     0   :  { %v1069_v29 = vmov 0   ;;  %s1380_s0 = inlined_call_operand.vmem [shape: s8[128,128], index: 0, kind: input, shape index: {}]   ;;  %s1381_s1 = inlined_call_operand.vmem [shape: bf16[128,256], index: 1, kind: input, shape index: {}, may-alias: {1,2}]   ;;  %s1382_s2 = inlined_call_operand.vmem [shape: bf16[128,256], index: 2, kind: input, shape index: {}, may-alias: {1,2}]   ;;  %s1383_s3 = inlined_call_operand.vmem [shape: f32[128,1], index: 3, kind: input, shape index: {}]   ;;  %s1384_s4 = inlined_call_operand.vmem [shape: f32[1,128], index: 4, kind: input, shape index: {}]   ;;  %s1385_s5 = inlined_call_operand.vmem [shape: bf16[128,128], index: 5, kind: output, shape index: {}]  }
   0x1   :  { %v29_v0 = vld [vmem:[%s1381_s1] sm:$0xf]  ;;  %v31_v1 = vld [vmem:[%s1381_s1 + $0x8] sm:$0xf]  ;;  %v33_v2 = vld [vmem:[%s1381_s1 + $0x10] sm:$0xf]  ;;  %1060 = vset.pattern.permute.xlu1 %v1069_v29  ;;  %1059 = vset.pattern.permute.xlu0 %v1069_v29 }
   0x2   :  { %30 = vst [vmem:[#allocation3] sm:$0xf] %v29_v0  ;;  %32 = vst [vmem:[#allocation3 + $0x4] sm:$0xf] %v31_v1  ;;  %v35_v3 = vld [vmem:[%s1381_s1 + $0x18] sm:$0xf] }
   0x3   :  { %34 = vst [vmem:[#allocation3 + $0x8] sm:$0xf] %v33_v2  ;;  %v37_v4 = vld [vmem:[%s1381_s1 + $0x20] sm:$0xf]  ;;  %v39_v5 = vld [vmem:[%s1381_s1 + $0x28] sm:$0xf] }
   0x4   :  { %36 = vst [vmem:[#allocation3 + $0xc] sm:$0xf] %v35_v3  ;;  %38 = vst [vmem:[#allocation3 + $0x10] sm:$0xf] %v37_v4  ;;  %v41_v6 = vld [vmem:[%s1381_s1 + $0x30] sm:$0xf] }
   0x5   :  { %40 = vst [vmem:[#allocation3 + $0x14] sm:$0xf] %v39_v5  ;;  %v43_v7 = vld [vmem:[%s1381_s1 + $0x38] sm:$0xf]  ;;  %v45_v8 = vld [vmem:[%s1381_s1 + $0x40] sm:$0xf] }
   0x6   :  { %42 = vst [vmem:[#allocation3 + $0x18] sm:$0xf] %v41_v6  ;;  %44 = vst [vmem:[#allocation3 + $0x1c] sm:$0xf] %v43_v7  ;;  %v47_v9 = vld [vmem:[%s1381_s1 + $0x48] sm:$0xf] }
   0x7   :  { %46 = vst [vmem:[#allocation3 + $0x20] sm:$0xf] %v45_v8  ;;  %v49_v10 = vld [vmem:[%s1381_s1 + $0x50] sm:$0xf]  ;;  %v51_v11 = vld [vmem:[%s1381_s1 + $0x58] sm:$0xf] }
   0x8   :  { %48 = vst [vmem:[#allocation3 + $0x24] sm:$0xf] %v47_v9  ;;  %50 = vst [vmem:[#allocation3 + $0x28] sm:$0xf] %v49_v10  ;;  %v53_v12 = vld [vmem:[%s1381_s1 + $0x60] sm:$0xf] }
   0x9   :  { %52 = vst [vmem:[#allocation3 + $0x2c] sm:$0xf] %v51_v11  ;;  %v55_v13 = vld [vmem:[%s1381_s1 + $0x68] sm:$0xf]  ;;  %v57_v14 = vld [vmem:[%s1381_s1 + $0x70] sm:$0xf] }
   0xa   :  { %54 = vst [vmem:[#allocation3 + $0x30] sm:$0xf] %v53_v12  ;;  %56 = vst [vmem:[#allocation3 + $0x34] sm:$0xf] %v55_v13  ;;  %v59_v15 = vld [vmem:[%s1381_s1 + $0x78] sm:$0xf] }
   0xb   :  { %58 = vst [vmem:[#allocation3 + $0x38] sm:$0xf] %v57_v14  ;;  %v260_v16 = vld [vmem:[%s1380_s0] sm:$0x3]  ;;  %v261_v17 = vld [vmem:[%s1380_s0 + $0x2] sm:$0x3] }
   0xc   :  { %60 = vst [vmem:[#allocation3 + $0x3c] sm:$0xf] %v59_v15  ;;  %v276_v18 = vunpack.c.l.s8.bf16 %v260_v16  ;;  %v277_v19 = vunpack.c.l.s8.bf16 %v261_v17  ;;  %v268_v20 = vld [vmem:[%s1380_s0 + $0x10] sm:$0x3]  ;;  %v269_v21 = vld [vmem:[%s1380_s0 + $0x12] sm:$0x3] }
   0xd   :  { %v284_v22 = vunpack.c.l.s8.bf16 %v268_v20  ;;  %v285_v23 = vunpack.c.l.s8.bf16 %v269_v21  ;;  %v1061_v24 = vld [vmem:[#allocation3] sm:$0xff]   ;;  %v1062_v25 = vld [vmem:[#allocation3 + $0x8] sm:$0xff]   ;;  %v1063_v28 = vld [vmem:[#allocation3 + $0x10] sm:$0xff]  }
   0xe   :  { %v859_v26 = vcombine.low %v276_v18, %v277_v19  ;;  %1010 = vmatprep.subr.bf16.mxu0 %v1061_v24  ;;  %1042 = vmatprep.subr.bf16.mxu1 %v1061_v24  ;;  %v1064_v30 = vld [vmem:[#allocation3 + $0x18] sm:$0xff]   ;;  %v554_v31 = vld [vmem:[%s1383_s3 + $0x10] sm:$0xff]  ;;  %v552_v32 = vld [vmem:[%s1383_s3] sm:$0xff] }
   0xf   :  { %v863_v27 = vcombine.low %v284_v22, %v285_v23  ;;  %1011 = vmatpush3.bf16.msra.mxu0 %v1061_v24  ;;  %1050 = vmatpush3.bf16.msra.mxu1 %v1061_v24  ;;  %v1065_v33 = vld [vmem:[#allocation3 + $0x20] sm:$0xff]   ;;  %v555_v34 = vld [vmem:[%s1383_s3 + $0x18] sm:$0xff]  ;;  %v553_v35 = vld [vmem:[%s1383_s3 + $0x8] sm:$0xff] }
  0x10   :  { %1012 = vmatprep.subr.bf16.mxu0 %v1062_v25  ;;  %1043 = vmatprep.subr.bf16.mxu1 %v1062_v25  ;;  %v1066_v36 = vld [vmem:[#allocation3 + $0x28] sm:$0xff]   ;;  %v556_v38 = vld [vmem:[%s1383_s3 + $0x20] sm:$0xff]  ;;  %v270_v42 = vld [vmem:[%s1380_s0 + $0x14] sm:$0x3] }
  0x11   :  { %1026 = vmatprep.mubr.bf16.mxu0 %v859_v26  ;;  %1034 = vmatprep.mubr.bf16.mxu1 %v863_v27  ;;  %v557_v37 = vld [vmem:[%s1383_s3 + $0x28] sm:$0xff]  ;;  %v1067_v39 = vld [vmem:[#allocation3 + $0x30] sm:$0xff]   ;;  %v262_v40 = vld [vmem:[%s1380_s0 + $0x4] sm:$0x3]  ;;  %v286_v53 = vunpack.c.l.s8.bf16 %v270_v42 }
  0x12   :  { %580 = vperm.xlu1 %1060, %v554_v31   ;;  %570 = vperm.xlu0 %1059, %v552_v32   ;;  %v263_v41 = vld [vmem:[%s1380_s0 + $0x6] sm:$0x3]  ;;  %v559_v43 = vld [vmem:[%s1383_s3 + $0x38] sm:$0xff]  ;;  %v558_v44 = vld [vmem:[%s1383_s3 + $0x30] sm:$0xff]  ;;  %v278_v51 = vunpack.c.l.s8.bf16 %v262_v40 }
  0x13   :  { %1013 = vmatpush3.bf16.msra.mxu0 %v1062_v25  ;;  %1051 = vmatpush3.bf16.msra.mxu1 %v1062_v25  ;;  %v1068_v45 = vld [vmem:[#allocation3 + $0x38] sm:$0xff]   ;;  %v271_v46 = vld [vmem:[%s1380_s0 + $0x16] sm:$0x3]  ;;  %v264_v47 = vld [vmem:[%s1380_s0 + $0x8] sm:$0x3]  ;;  %v279_v52 = vunpack.c.l.s8.bf16 %v263_v41 }
  0x14   :  { %1014 = vmatprep.subr.bf16.mxu0 %v1063_v28  ;;  %1044 = vmatprep.subr.bf16.mxu1 %v1063_v28  ;;  %v265_v48 = vld [vmem:[%s1380_s0 + $0xa] sm:$0x3]  ;;  %v272_v49 = vld [vmem:[%s1380_s0 + $0x18] sm:$0x3]  ;;  %v273_v50 = vld [vmem:[%s1380_s0 + $0x1a] sm:$0x3]  ;;  %v287_v54 = vunpack.c.l.s8.bf16 %v271_v46  ;;  %v280_v57 = vunpack.c.l.s8.bf16 %v264_v47 }
  0x15   :  { %v561_v55 = vld [vmem:[%s1383_s3 + $0x48] sm:$0xff]  ;;  %v560_v56 = vld [vmem:[%s1383_s3 + $0x40] sm:$0xff]  ;;  %v281_v58 = vunpack.c.l.s8.bf16 %v265_v48  ;;  %v288_v59 = vunpack.c.l.s8.bf16 %v272_v49  ;;  %v289_v60 = vunpack.c.l.s8.bf16 %v273_v50  ;;  %v860_v61 = vcombine.low %v278_v51, %v279_v52  ;;  %v563_v0 = vld [vmem:[%s1383_s3 + $0x58] sm:$0xff] }
  0x16   :  { %585 = vperm.xlu1 %1060, %v555_v34   ;;  %575 = vperm.xlu0 %1059, %v553_v35   ;;  %v864_v62 = vcombine.low %v286_v53, %v287_v54  ;;  %v266_v63 = vld [vmem:[%s1380_s0 + $0xc] sm:$0x3]  ;;  %v562_v1 = vld [vmem:[%s1383_s3 + $0x50] sm:$0xff]  ;;  %v267_v4 = vld [vmem:[%s1380_s0 + $0xe] sm:$0x3] }
  0x17   :  { %1015 = vmatpush3.bf16.msra.mxu0 %v1063_v28  ;;  %1052 = vmatpush3.bf16.msra.mxu1 %v1063_v28  ;;  %v861_v2 = vcombine.low %v280_v57, %v281_v58  ;;  %v865_v3 = vcombine.low %v288_v59, %v289_v60  ;;  %v274_v5 = vld [vmem:[%s1380_s0 + $0x1c] sm:$0x3]  ;;  %v275_v6 = vld [vmem:[%s1380_s0 + $0x1e] sm:$0x3]  ;;  %v282_v7 = vunpack.c.l.s8.bf16 %v266_v63  ;;  %v283_v8 = vunpack.c.l.s8.bf16 %v267_v4  ;;  %v565_v11 = vld [vmem:[%s1383_s3 + $0x68] sm:$0xff] }
  0x18   :  { %1016 = vmatprep.subr.bf16.mxu0 %v1064_v30  ;;  %1045 = vmatprep.subr.bf16.mxu1 %v1064_v30  ;;  %v290_v9 = vunpack.c.l.s8.bf16 %v274_v5  ;;  %v291_v10 = vunpack.c.l.s8.bf16 %v275_v6  ;;  %v564_v12 = vld [vmem:[%s1383_s3 + $0x60] sm:$0xff]  ;;  %v567_v15 = vld [vmem:[%s1383_s3 + $0x78] sm:$0xff]  ;;  %v566_v16 = vld [vmem:[%s1383_s3 + $0x70] sm:$0xff] }
  0x19   :  { %v862_v13 = vcombine.low %v282_v7, %v283_v8  ;;  %v845_v17 = vld [vmem:[%s1382_s2 + $0x14] sm:$0xf]  ;;  %v846_v18 = vld [vmem:[%s1382_s2 + $0x1c] sm:$0xf]  ;;  %v843_v21 = vld [vmem:[%s1382_s2 + $0x4] sm:$0xf] }
  0x1a   :  { %595 = vperm.xlu1 %1060, %v557_v37   ;;  %590 = vperm.xlu0 %1059, %v556_v38   ;;  %v866_v14 = vcombine.low %v290_v9, %v291_v10  ;;  %136 = vst [vmem:[#allocation4 + $0x8] sm:$0xf] %v845_v17  ;;  %138 = vst [vmem:[#allocation4 + $0xc] sm:$0xf] %v846_v18  ;;  %v853_v19 = vld [vmem:[%s1382_s2 + $0x54] sm:$0xf] }
  0x1b   :  { %1017 = vmatpush3.bf16.msra.mxu0 %v1064_v30  ;;  %1053 = vmatpush3.bf16.msra.mxu1 %v1064_v30  ;;  %v854_v20 = vld [vmem:[%s1382_s2 + $0x5c] sm:$0xf]  ;;  %152 = vst [vmem:[#allocation4 + $0x28] sm:$0xf] %v853_v19  ;;  %v844_v22 = vld [vmem:[%s1382_s2 + $0xc] sm:$0xf] }
  0x1c   :  { %1018 = vmatprep.subr.bf16.mxu0 %v1065_v33  ;;  %1046 = vmatprep.subr.bf16.mxu1 %v1065_v33  ;;  %154 = vst [vmem:[#allocation4 + $0x2c] sm:$0xf] %v854_v20  ;;  %v851_v23 = vld [vmem:[%s1382_s2 + $0x44] sm:$0xf]  ;;  %132 = vst [vmem:[#allocation4] sm:$0xf] %v843_v21 }
  0x1d   :  { %134 = vst [vmem:[#allocation4 + $0x4] sm:$0xf] %v844_v22  ;;  %148 = vst [vmem:[#allocation4 + $0x20] sm:$0xf] %v851_v23  ;;  %v852_v24 = vld [vmem:[%s1382_s2 + $0x4c] sm:$0xf] }
  0x1e   :  { %605 = vperm.xlu1 %1060, %v559_v43   ;;  %600 = vperm.xlu0 %1059, %v558_v44   ;;  %150 = vst [vmem:[#allocation4 + $0x24] sm:$0xf] %v852_v24  ;;  %v849_v25 = vld [vmem:[%s1382_s2 + $0x34] sm:$0xf]  ;;  %v850_v26 = vld [vmem:[%s1382_s2 + $0x3c] sm:$0xf] }
  0x1f   :  { %1019 = vmatpush3.bf16.msra.mxu0 %v1065_v33  ;;  %1054 = vmatpush3.bf16.msra.mxu1 %v1065_v33  ;;  %144 = vst [vmem:[#allocation4 + $0x18] sm:$0xf] %v849_v25  ;;  %v857_v27 = vld [vmem:[%s1382_s2 + $0x74] sm:$0xf]  ;;  %146 = vst [vmem:[#allocation4 + $0x1c] sm:$0xf] %v850_v26 }
  0x20   :  { %1020 = vmatprep.subr.bf16.mxu0 %v1066_v36  ;;  %1047 = vmatprep.subr.bf16.mxu1 %v1066_v36  ;;  %160 = vst [vmem:[#allocation4 + $0x38] sm:$0xf] %v857_v27  ;;  %v858_v28 = vld [vmem:[%s1382_s2 + $0x7c] sm:$0xf]  ;;  %v847_v29 = vld [vmem:[%s1382_s2 + $0x24] sm:$0xf] }
  0x21   :  { %162 = vst [vmem:[#allocation4 + $0x3c] sm:$0xf] %v858_v28  ;;  %140 = vst [vmem:[#allocation4 + $0x10] sm:$0xf] %v847_v29  ;;  %v848_v30 = vld [vmem:[%s1382_s2 + $0x2c] sm:$0xf] }
  0x22   :  { %615 = vperm.xlu1 %1060, %v561_v55   ;;  %610 = vperm.xlu0 %1059, %v560_v56   ;;  %v855_v31 = vld [vmem:[%s1382_s2 + $0x64] sm:$0xf]  ;;  %142 = vst [vmem:[#allocation4 + $0x14] sm:$0xf] %v848_v30  ;;  %v856_v32 = vld [vmem:[%s1382_s2 + $0x6c] sm:$0xf] }
  0x23   :  { %1021 = vmatpush3.bf16.msra.mxu0 %v1066_v36  ;;  %1055 = vmatpush3.bf16.msra.mxu1 %v1066_v36  ;;  %156 = vst [vmem:[#allocation4 + $0x30] sm:$0xf] %v855_v31  ;;  %158 = vst [vmem:[#allocation4 + $0x34] sm:$0xf] %v856_v32  ;;  %v980_v44 = vld [vmem:[#allocation4 + $0x8] sm:$0xff]  }
  0x24   :  { %1022 = vmatprep.subr.bf16.mxu0 %v1067_v39  ;;  %1048 = vmatprep.subr.bf16.mxu1 %v1067_v39  ;;  %v909_v46 = vld [vmem:[#allocation4] sm:$0xff]   ;;  %v914_v52 = vunpack.c.l.bf16 %v980_v44  ;;  %v915_v58 = vunpack.c.h.bf16 %v980_v44 }
  0x25   :  { %v983_v47 = vld [vmem:[#allocation4 + $0x20] sm:$0xff]   ;;  %v910_v54 = vunpack.c.l.bf16 %v909_v46  ;;  %v911_v60 = vunpack.c.h.bf16 %v909_v46 }
  0x26   :  { %625 = vperm.xlu1 %1060, %v563_v0   ;;  %620 = vperm.xlu0 %1059, %v562_v1   ;;  %v1300_v48 = vld [vmem:[#allocation4 + $0x18] sm:$0xff]   ;;  %v926_v55 = vunpack.c.l.bf16 %v983_v47  ;;  %v1319_v10 = vld [vmem:[%s1384_s4] ss:$0 sm:$0xff] }
  0x27   :  { %1023 = vmatpush3.bf16.msra.mxu0 %v1067_v39  ;;  %1056 = vmatpush3.bf16.msra.mxu1 %v1067_v39  ;;  %v922_v0 = vunpack.c.l.bf16 %v1300_v48  ;;  %v923_v8 = vunpack.c.h.bf16 %v1300_v48 }
  0x28   :  { %1024 = vmatprep.subr.bf16.mxu0 %v1068_v45  ;;  %1049 = vmatprep.subr.bf16.mxu1 %v1068_v45  ;;  %v1302_v49 = vld [vmem:[#allocation4 + $0x38] sm:$0xff]  }
  0x29   :  { %v1304_v50 = vld [vmem:[#allocation4 + $0x10] sm:$0xff]   ;;  %v938_v1 = vunpack.c.l.bf16 %v1302_v49  ;;  %v939_v9 = vunpack.c.h.bf16 %v1302_v49 }
  0x2a   :  { %635 = vperm.xlu1 %1060, %v565_v11   ;;  %630 = vperm.xlu0 %1059, %v564_v12   ;;  %v1306_v51 = vld [vmem:[#allocation4 + $0x30] sm:$0xff]  }
  0x2b   :  { %1025 = vmatpush3.bf16.msra.mxu0 %v1068_v45  ;;  %1057 = vmatpush3.bf16.msra.mxu1 %v1068_v45  ;;  %v984_v45 = vld [vmem:[#allocation4 + $0x28] sm:$0xff]  }
  0x2c   :  { %v930_v53 = vunpack.c.l.bf16 %v984_v45  ;;  %v931_v59 = vunpack.c.h.bf16 %v984_v45 }
  0x2e   :  { %1027 = vmatmul.mubr.bf16.vlgmr.msra.gmra.mrb[0].mxu0 %v860_v61  ;;  %1035 = vmatmul.mubr.bf16.vlgmr.msra.gmra.mrb[0].mxu1 %v864_v62  ;;  %v927_v61 = vunpack.c.h.bf16 %v983_v47 }
  0x2f   :  { %1030 = vmatprep.mubr.bf16.mxu0 %v861_v2  ;;  %1038 = vmatprep.mubr.bf16.mxu1 %v865_v3  ;;  %v918_v2 = vunpack.c.l.bf16 %v1304_v50  ;;  %v934_v3 = vunpack.c.l.bf16 %v1306_v51 }
  0x30   :  { %645 = vperm.xlu1 %1060, %v567_v15   ;;  %640 = vperm.xlu0 %1059, %v566_v16   ;;  %v919_v15 = vunpack.c.h.bf16 %v1304_v50  ;;  %v935_v16 = vunpack.c.h.bf16 %v1306_v51 }
  0x36   :  { %1031 = vmatmul.mubr.bf16.gmra.mrb[4].mxu0 %v862_v13  ;;  %1039 = vmatmul.mubr.bf16.gmra.mrb[4].mxu1 %v866_v14 }
  0x91   :  { %v571_v33 = vpop.permute.xlu0 %570  ;;  %v581_v34 = vpop.permute.xlu1 %580 }
  0x95   :  { %v576_v35 = vpop.permute.xlu0 %575  ;;  %v586_v36 = vpop.permute.xlu1 %585 }
  0x99   :  { %v1292_v37 = vpop.permute.xlu0 %590  ;;  %v1294_v38 = vpop.permute.xlu1 %595 }
  0x9d   :  { %v1296_v39 = vpop.permute.xlu0 %600  ;;  %v1298_v40 = vpop.permute.xlu1 %605 }
  0xa1   :  { %v611_v41 = vpop.permute.xlu0 %610  ;;  %v616_v42 = vpop.permute.xlu1 %615 }
  0xa5   :  { %v621_v43 = vpop.permute.xlu0 %620  ;;  %v626_v56 = vpop.permute.xlu1 %625 }
  0xa9   :  { %v1308_v57 = vpop.permute.xlu0 %630  ;;  %v636_v31 = vpop.permute.xlu1 %635 }
 0x101   :  { %v1028_v62 = vpop.f32.mrb[0].mxu0  ;;  %v1036_v63 = vpop.f32.mrb[0].mxu1 }
 0x102   :  { %v650_v4 = vmul.f32 %v1028_v62, %v581_v34  ;;  %v658_v5 = vmul.f32 %v1036_v63, %v621_v43  ;;  %v438_v6 = vpop.f32.mrb[1].mxu0  ;;  %v470_v7 = vpop.f32.mrb[1].mxu1 }
 0x103   :  { %v648_v11 = vmul.f32 %v571_v33, %v438_v6  ;;  %v656_v12 = vmul.f32 %v611_v41, %v470_v7  ;;  %v1029_v13 = vpop.f32.mrb[2].mxu0  ;;  %v1037_v14 = vpop.f32.mrb[2].mxu1 }
 0x104   :  { %v698_v17 = vadd.f32 %v914_v52, %v650_v4  ;;  %v706_v18 = vadd.f32 %v930_v53, %v658_v5  ;;  %v651_v19 = vmul.f32 %v1029_v13, %v586_v36  ;;  %v659_v20 = vmul.f32 %v1037_v14, %v626_v56  ;;  %v441_v21 = vpop.f32.mrb[3].mxu0  ;;  %v473_v22 = vpop.f32.mrb[3].mxu1 }
 0x105   :  { %v696_v23 = vadd.f32 %v910_v54, %v648_v11  ;;  %v704_v24 = vadd.f32 %v926_v55, %v656_v12  ;;  %v649_v25 = vmul.f32 %v576_v35, %v441_v21  ;;  %v657_v26 = vmul.f32 %v616_v42, %v473_v22  ;;  %v641_v41 = vpop.permute.xlu0 %640 }
 0x106   :  { %v721_v27 = vadd.f32 %v1319_v10, %v698_v17  ;;  %v729_v28 = vadd.f32 %v1319_v10, %v706_v18  ;;  %v699_v29 = vadd.f32 %v915_v58, %v651_v19  ;;  %v707_v30 = vadd.f32 %v931_v59, %v659_v20  ;;  %v646_v19 = vpop.permute.xlu1 %645 }
 0x107   :  { %v719_v32 = vadd.f32 %v1319_v10, %v696_v23  ;;  %v727_v33 = vadd.f32 %v1319_v10, %v704_v24  ;;  %v697_v34 = vadd.f32 %v911_v60, %v649_v25  ;;  %v705_v36 = vadd.f32 %v927_v61, %v657_v26 }
 0x108   :  { %v737_v43 = vmax.f32 %v721_v27, 0.0  ;;  %v745_v44 = vmax.f32 %v729_v28, 0.0  ;;  %v722_v45 = vadd.f32 %v1319_v10, %v699_v29  ;;  %v730_v35 = vadd.f32 %v1319_v10, %v707_v30 }
 0x109   :  { %v735_v42 = vmax.f32 %v719_v32, 0.0  ;;  %v743_v46 = vmax.f32 %v727_v33, 0.0  ;;  %v720_v47 = vadd.f32 %v1319_v10, %v697_v34  ;;  %v728_v52 = vadd.f32 %v1319_v10, %v705_v36  ;;  %v1032_v53 = vpop.f32.mrb[4].mxu0  ;;  %v1040_v54 = vpop.f32.mrb[4].mxu1 }
 0x10a   :  { %v738_v55 = vmax.f32 %v722_v45, 0.0  ;;  %v746_v56 = vmax.f32 %v730_v35, 0.0  ;;  %v654_v58 = vmul.f32 %v1032_v53, %v1296_v39  ;;  %v662_v59 = vmul.f32 %v1040_v54, %v641_v41  ;;  %v454_v60 = vpop.f32.mrb[5].mxu0  ;;  %v486_v61 = vpop.f32.mrb[5].mxu1 }
 0x10b   :  { %v736_v62 = vmax.f32 %v720_v47, 0.0  ;;  %v744_v63 = vmax.f32 %v728_v52, 0.0  ;;  %v652_v4 = vmul.f32 %v1292_v37, %v454_v60  ;;  %v660_v5 = vmul.f32 %v1308_v57, %v486_v61  ;;  %v1033_v6 = vpop.f32.mrb[6].mxu0  ;;  %v1041_v7 = vpop.f32.mrb[6].mxu1 }
 0x10c   :  { %v948_v11 = vpack.c.bf16 %v738_v55, %v737_v43  ;;  %v968_v12 = vpack.c.bf16 %v746_v56, %v745_v44  ;;  %v702_v13 = vadd.f32 %v922_v0, %v654_v58  ;;  %v710_v14 = vadd.f32 %v938_v1, %v662_v59  ;;  %v457_v17 = vpop.f32.mrb[7].mxu0  ;;  %v489_v18 = vpop.f32.mrb[7].mxu1 }
 0x10d   :  { %v943_v20 = vpack.c.bf16 %v736_v62, %v735_v42  ;;  %v963_v39 = vpack.c.bf16 %v744_v63, %v743_v46  ;;  %v700_v21 = vadd.f32 %v918_v2, %v652_v4  ;;  %v708_v22 = vadd.f32 %v934_v3, %v660_v5 }
 0x10e   :  { %987 = vst [vmem:[%s1385_s5 + $0x8] sm:$0xff] %v948_v11   ;;  %991 = vst [vmem:[%s1385_s5 + $0x28] sm:$0xff] %v968_v12   ;;  %v655_v37 = vmul.f32 %v1033_v6, %v1298_v40  ;;  %v663_v57 = vmul.f32 %v1041_v7, %v646_v19  ;;  %v653_v0 = vmul.f32 %v1294_v38, %v457_v17 }
 0x10f   :  { %944 = vst [vmem:[%s1385_s5] sm:$0xff] %v943_v20   ;;  %990 = vst [vmem:[%s1385_s5 + $0x20] sm:$0xff] %v963_v39   ;;  %v661_v1 = vmul.f32 %v636_v31, %v489_v18  ;;  %v725_v2 = vadd.f32 %v1319_v10, %v702_v13  ;;  %v733_v3 = vadd.f32 %v1319_v10, %v710_v14 }
 0x110   :  { %v703_v23 = vadd.f32 %v923_v8, %v655_v37  ;;  %v711_v40 = vadd.f32 %v939_v9, %v663_v57  ;;  %v723_v24 = vadd.f32 %v1319_v10, %v700_v21  ;;  %v731_v25 = vadd.f32 %v1319_v10, %v708_v22 }
 0x111   :  { %v701_v26 = vadd.f32 %v919_v15, %v653_v0  ;;  %v709_v38 = vadd.f32 %v935_v16, %v661_v1  ;;  %v741_v49 = vmax.f32 %v725_v2, 0.0  ;;  %v749_v9 = vmax.f32 %v733_v3, 0.0 }
 0x112   :  { %v726_v27 = vadd.f32 %v1319_v10, %v703_v23  ;;  %v734_v28 = vadd.f32 %v1319_v10, %v711_v40  ;;  %v739_v31 = vmax.f32 %v723_v24, 0.0  ;;  %v747_v32 = vmax.f32 %v731_v25, 0.0 }
 0x113   :  { %v724_v48 = vadd.f32 %v1319_v10, %v701_v26  ;;  %v732_v8 = vadd.f32 %v1319_v10, %v709_v38 }
 0x114   :  { %v742_v29 = vmax.f32 %v726_v27, 0.0  ;;  %v750_v30 = vmax.f32 %v734_v28, 0.0 }
 0x115   :  { %v740_v33 = vmax.f32 %v724_v48, 0.0  ;;  %v748_v50 = vmax.f32 %v732_v8, 0.0 }
 0x116   :  { %v958_v15 = vpack.c.bf16 %v742_v29, %v741_v49  ;;  %v978_v34 = vpack.c.bf16 %v750_v30, %v749_v9 }
 0x117   :  { %v953_v51 = vpack.c.bf16 %v740_v33, %v739_v31  ;;  %v973_v16 = vpack.c.bf16 %v748_v50, %v747_v32 }
 0x118   :  { %989 = vst [vmem:[%s1385_s5 + $0x18] sm:$0xff] %v958_v15   ;;  %993 = vst [vmem:[%s1385_s5 + $0x38] sm:$0xff] %v978_v34  }
 0x119   :  { %988 = vst [vmem:[%s1385_s5 + $0x10] sm:$0xff] %v953_v51   ;;  %992 = vst [vmem:[%s1385_s5 + $0x30] sm:$0xff] %v973_v16  }

// kernel: graphsage_forward.11
= control target key start
LH: loop header
LB: loop body
LE: loop exit
PB: predicated region body
PF: predicated region fallthrough
CT: control target
= control target key end

     0   :  { %v910_v29 = vmov 0   ;;  %s1220_s0 = inlined_call_operand.vmem [shape: s8[128,128], index: 0, kind: input, shape index: {}]   ;;  %s1221_s1 = inlined_call_operand.vmem [shape: bf16[128,256], index: 1, kind: input, shape index: {}, may-alias: {1,2}]   ;;  %s1222_s2 = inlined_call_operand.vmem [shape: bf16[128,256], index: 2, kind: input, shape index: {}, may-alias: {1,2}]   ;;  %s1223_s3 = inlined_call_operand.vmem [shape: f32[128,1], index: 3, kind: input, shape index: {}]   ;;  %s1224_s4 = inlined_call_operand.vmem [shape: f32[1,128], index: 4, kind: input, shape index: {}]   ;;  %s1225_s5 = inlined_call_operand.vmem [shape: f32[128,128], index: 5, kind: output, shape index: {}]  }
   0x1   :  { %v29_v0 = vld [vmem:[%s1221_s1] sm:$0xf]  ;;  %v31_v1 = vld [vmem:[%s1221_s1 + $0x8] sm:$0xf]  ;;  %v33_v2 = vld [vmem:[%s1221_s1 + $0x10] sm:$0xf]  ;;  %901 = vset.pattern.permute.xlu1 %v910_v29  ;;  %900 = vset.pattern.permute.xlu0 %v910_v29 }
   0x2   :  { %30 = vst [vmem:[#allocation3] sm:$0xf] %v29_v0  ;;  %32 = vst [vmem:[#allocation3 + $0x4] sm:$0xf] %v31_v1  ;;  %v35_v3 = vld [vmem:[%s1221_s1 + $0x18] sm:$0xf] }
   0x3   :  { %34 = vst [vmem:[#allocation3 + $0x8] sm:$0xf] %v33_v2  ;;  %v37_v4 = vld [vmem:[%s1221_s1 + $0x20] sm:$0xf]  ;;  %v39_v5 = vld [vmem:[%s1221_s1 + $0x28] sm:$0xf] }
   0x4   :  { %36 = vst [vmem:[#allocation3 + $0xc] sm:$0xf] %v35_v3  ;;  %38 = vst [vmem:[#allocation3 + $0x10] sm:$0xf] %v37_v4  ;;  %v41_v6 = vld [vmem:[%s1221_s1 + $0x30] sm:$0xf] }
   0x5   :  { %40 = vst [vmem:[#allocation3 + $0x14] sm:$0xf] %v39_v5  ;;  %v43_v7 = vld [vmem:[%s1221_s1 + $0x38] sm:$0xf]  ;;  %v45_v8 = vld [vmem:[%s1221_s1 + $0x40] sm:$0xf] }
   0x6   :  { %42 = vst [vmem:[#allocation3 + $0x18] sm:$0xf] %v41_v6  ;;  %44 = vst [vmem:[#allocation3 + $0x1c] sm:$0xf] %v43_v7  ;;  %v47_v9 = vld [vmem:[%s1221_s1 + $0x48] sm:$0xf] }
   0x7   :  { %46 = vst [vmem:[#allocation3 + $0x20] sm:$0xf] %v45_v8  ;;  %v49_v10 = vld [vmem:[%s1221_s1 + $0x50] sm:$0xf]  ;;  %v51_v11 = vld [vmem:[%s1221_s1 + $0x58] sm:$0xf] }
   0x8   :  { %48 = vst [vmem:[#allocation3 + $0x24] sm:$0xf] %v47_v9  ;;  %50 = vst [vmem:[#allocation3 + $0x28] sm:$0xf] %v49_v10  ;;  %v53_v12 = vld [vmem:[%s1221_s1 + $0x60] sm:$0xf] }
   0x9   :  { %52 = vst [vmem:[#allocation3 + $0x2c] sm:$0xf] %v51_v11  ;;  %v55_v13 = vld [vmem:[%s1221_s1 + $0x68] sm:$0xf]  ;;  %v57_v14 = vld [vmem:[%s1221_s1 + $0x70] sm:$0xf] }
   0xa   :  { %54 = vst [vmem:[#allocation3 + $0x30] sm:$0xf] %v53_v12  ;;  %56 = vst [vmem:[#allocation3 + $0x34] sm:$0xf] %v55_v13  ;;  %v59_v15 = vld [vmem:[%s1221_s1 + $0x78] sm:$0xf] }
   0xb   :  { %58 = vst [vmem:[#allocation3 + $0x38] sm:$0xf] %v57_v14  ;;  %v260_v16 = vld [vmem:[%s1220_s0] sm:$0x3]  ;;  %v261_v17 = vld [vmem:[%s1220_s0 + $0x2] sm:$0x3] }
   0xc   :  { %60 = vst [vmem:[#allocation3 + $0x3c] sm:$0xf] %v59_v15  ;;  %v276_v18 = vunpack.c.l.s8.bf16 %v260_v16  ;;  %v277_v19 = vunpack.c.l.s8.bf16 %v261_v17  ;;  %v268_v20 = vld [vmem:[%s1220_s0 + $0x10] sm:$0x3]  ;;  %v269_v21 = vld [vmem:[%s1220_s0 + $0x12] sm:$0x3] }
   0xd   :  { %v284_v22 = vunpack.c.l.s8.bf16 %v268_v20  ;;  %v285_v23 = vunpack.c.l.s8.bf16 %v269_v21  ;;  %v902_v24 = vld [vmem:[#allocation3] sm:$0xff]   ;;  %v903_v25 = vld [vmem:[#allocation3 + $0x8] sm:$0xff]   ;;  %v904_v28 = vld [vmem:[#allocation3 + $0x10] sm:$0xff]  }
   0xe   :  { %v779_v26 = vcombine.low %v276_v18, %v277_v19  ;;  %851 = vmatprep.subr.bf16.mxu0 %v902_v24  ;;  %883 = vmatprep.subr.bf16.mxu1 %v902_v24  ;;  %v905_v30 = vld [vmem:[#allocation3 + $0x18] sm:$0xff]   ;;  %v554_v31 = vld [vmem:[%s1223_s3 + $0x10] sm:$0xff]  ;;  %v552_v32 = vld [vmem:[%s1223_s3] sm:$0xff] }
   0xf   :  { %v783_v27 = vcombine.low %v284_v22, %v285_v23  ;;  %852 = vmatpush3.bf16.msra.mxu0 %v902_v24  ;;  %891 = vmatpush3.bf16.msra.mxu1 %v902_v24  ;;  %v906_v33 = vld [vmem:[#allocation3 + $0x20] sm:$0xff]   ;;  %v555_v34 = vld [vmem:[%s1223_s3 + $0x18] sm:$0xff]  ;;  %v553_v35 = vld [vmem:[%s1223_s3 + $0x8] sm:$0xff] }
  0x10   :  { %853 = vmatprep.subr.bf16.mxu0 %v903_v25  ;;  %884 = vmatprep.subr.bf16.mxu1 %v903_v25  ;;  %v907_v36 = vld [vmem:[#allocation3 + $0x28] sm:$0xff]   ;;  %v556_v38 = vld [vmem:[%s1223_s3 + $0x20] sm:$0xff]  ;;  %v270_v42 = vld [vmem:[%s1220_s0 + $0x14] sm:$0x3] }
  0x11   :  { %867 = vmatprep.mubr.bf16.mxu0 %v779_v26  ;;  %875 = vmatprep.mubr.bf16.mxu1 %v783_v27  ;;  %v557_v37 = vld [vmem:[%s1223_s3 + $0x28] sm:$0xff]  ;;  %v908_v39 = vld [vmem:[#allocation3 + $0x30] sm:$0xff]   ;;  %v262_v40 = vld [vmem:[%s1220_s0 + $0x4] sm:$0x3]  ;;  %v286_v53 = vunpack.c.l.s8.bf16 %v270_v42 }
  0x12   :  { %580 = vperm.xlu1 %901, %v554_v31   ;;  %570 = vperm.xlu0 %900, %v552_v32   ;;  %v263_v41 = vld [vmem:[%s1220_s0 + $0x6] sm:$0x3]  ;;  %v559_v43 = vld [vmem:[%s1223_s3 + $0x38] sm:$0xff]  ;;  %v558_v44 = vld [vmem:[%s1223_s3 + $0x30] sm:$0xff]  ;;  %v278_v51 = vunpack.c.l.s8.bf16 %v262_v40 }
  0x13   :  { %854 = vmatpush3.bf16.msra.mxu0 %v903_v25  ;;  %892 = vmatpush3.bf16.msra.mxu1 %v903_v25  ;;  %v909_v45 = vld [vmem:[#allocation3 + $0x38] sm:$0xff]   ;;  %v271_v46 = vld [vmem:[%s1220_s0 + $0x16] sm:$0x3]  ;;  %v264_v47 = vld [vmem:[%s1220_s0 + $0x8] sm:$0x3]  ;;  %v279_v52 = vunpack.c.l.s8.bf16 %v263_v41 }
  0x14   :  { %855 = vmatprep.subr.bf16.mxu0 %v904_v28  ;;  %885 = vmatprep.subr.bf16.mxu1 %v904_v28  ;;  %v265_v48 = vld [vmem:[%s1220_s0 + $0xa] sm:$0x3]  ;;  %v272_v49 = vld [vmem:[%s1220_s0 + $0x18] sm:$0x3]  ;;  %v273_v50 = vld [vmem:[%s1220_s0 + $0x1a] sm:$0x3]  ;;  %v287_v54 = vunpack.c.l.s8.bf16 %v271_v46  ;;  %v280_v57 = vunpack.c.l.s8.bf16 %v264_v47 }
  0x15   :  { %v561_v55 = vld [vmem:[%s1223_s3 + $0x48] sm:$0xff]  ;;  %v560_v56 = vld [vmem:[%s1223_s3 + $0x40] sm:$0xff]  ;;  %v281_v58 = vunpack.c.l.s8.bf16 %v265_v48  ;;  %v288_v59 = vunpack.c.l.s8.bf16 %v272_v49  ;;  %v289_v60 = vunpack.c.l.s8.bf16 %v273_v50  ;;  %v780_v61 = vcombine.low %v278_v51, %v279_v52  ;;  %v563_v0 = vld [vmem:[%s1223_s3 + $0x58] sm:$0xff] }
  0x16   :  { %585 = vperm.xlu1 %901, %v555_v34   ;;  %575 = vperm.xlu0 %900, %v553_v35   ;;  %v784_v62 = vcombine.low %v286_v53, %v287_v54  ;;  %v266_v63 = vld [vmem:[%s1220_s0 + $0xc] sm:$0x3]  ;;  %v562_v1 = vld [vmem:[%s1223_s3 + $0x50] sm:$0xff]  ;;  %v267_v4 = vld [vmem:[%s1220_s0 + $0xe] sm:$0x3] }
  0x17   :  { %856 = vmatpush3.bf16.msra.mxu0 %v904_v28  ;;  %893 = vmatpush3.bf16.msra.mxu1 %v904_v28  ;;  %v781_v2 = vcombine.low %v280_v57, %v281_v58  ;;  %v785_v3 = vcombine.low %v288_v59, %v289_v60  ;;  %v274_v5 = vld [vmem:[%s1220_s0 + $0x1c] sm:$0x3]  ;;  %v275_v6 = vld [vmem:[%s1220_s0 + $0x1e] sm:$0x3]  ;;  %v282_v7 = vunpack.c.l.s8.bf16 %v266_v63  ;;  %v283_v8 = vunpack.c.l.s8.bf16 %v267_v4  ;;  %v565_v11 = vld [vmem:[%s1223_s3 + $0x68] sm:$0xff] }
  0x18   :  { %857 = vmatprep.subr.bf16.mxu0 %v905_v30  ;;  %886 = vmatprep.subr.bf16.mxu1 %v905_v30  ;;  %v290_v9 = vunpack.c.l.s8.bf16 %v274_v5  ;;  %v291_v10 = vunpack.c.l.s8.bf16 %v275_v6  ;;  %v564_v12 = vld [vmem:[%s1223_s3 + $0x60] sm:$0xff]  ;;  %v567_v15 = vld [vmem:[%s1223_s3 + $0x78] sm:$0xff]  ;;  %v566_v16 = vld [vmem:[%s1223_s3 + $0x70] sm:$0xff] }
  0x19   :  { %v782_v13 = vcombine.low %v282_v7, %v283_v8  ;;  %v765_v17 = vld [vmem:[%s1222_s2 + $0x14] sm:$0xf]  ;;  %v766_v18 = vld [vmem:[%s1222_s2 + $0x1c] sm:$0xf]  ;;  %v763_v21 = vld [vmem:[%s1222_s2 + $0x4] sm:$0xf] }
  0x1a   :  { %595 = vperm.xlu1 %901, %v557_v37   ;;  %590 = vperm.xlu0 %900, %v556_v38   ;;  %v786_v14 = vcombine.low %v290_v9, %v291_v10  ;;  %136 = vst [vmem:[#allocation4 + $0x8] sm:$0xf] %v765_v17  ;;  %138 = vst [vmem:[#allocation4 + $0xc] sm:$0xf] %v766_v18  ;;  %v773_v19 = vld [vmem:[%s1222_s2 + $0x54] sm:$0xf] }
  0x1b   :  { %858 = vmatpush3.bf16.msra.mxu0 %v905_v30  ;;  %894 = vmatpush3.bf16.msra.mxu1 %v905_v30  ;;  %v774_v20 = vld [vmem:[%s1222_s2 + $0x5c] sm:$0xf]  ;;  %152 = vst [vmem:[#allocation4 + $0x28] sm:$0xf] %v773_v19  ;;  %v764_v22 = vld [vmem:[%s1222_s2 + $0xc] sm:$0xf] }
  0x1c   :  { %859 = vmatprep.subr.bf16.mxu0 %v906_v33  ;;  %887 = vmatprep.subr.bf16.mxu1 %v906_v33  ;;  %154 = vst [vmem:[#allocation4 + $0x2c] sm:$0xf] %v774_v20  ;;  %v771_v23 = vld [vmem:[%s1222_s2 + $0x44] sm:$0xf]  ;;  %132 = vst [vmem:[#allocation4] sm:$0xf] %v763_v21 }
  0x1d   :  { %134 = vst [vmem:[#allocation4 + $0x4] sm:$0xf] %v764_v22  ;;  %148 = vst [vmem:[#allocation4 + $0x20] sm:$0xf] %v771_v23  ;;  %v772_v24 = vld [vmem:[%s1222_s2 + $0x4c] sm:$0xf] }
  0x1e   :  { %605 = vperm.xlu1 %901, %v559_v43   ;;  %600 = vperm.xlu0 %900, %v558_v44   ;;  %150 = vst [vmem:[#allocation4 + $0x24] sm:$0xf] %v772_v24  ;;  %v769_v25 = vld [vmem:[%s1222_s2 + $0x34] sm:$0xf]  ;;  %v770_v26 = vld [vmem:[%s1222_s2 + $0x3c] sm:$0xf] }
  0x1f   :  { %860 = vmatpush3.bf16.msra.mxu0 %v906_v33  ;;  %895 = vmatpush3.bf16.msra.mxu1 %v906_v33  ;;  %144 = vst [vmem:[#allocation4 + $0x18] sm:$0xf] %v769_v25  ;;  %v777_v27 = vld [vmem:[%s1222_s2 + $0x74] sm:$0xf]  ;;  %146 = vst [vmem:[#allocation4 + $0x1c] sm:$0xf] %v770_v26 }
  0x20   :  { %861 = vmatprep.subr.bf16.mxu0 %v907_v36  ;;  %888 = vmatprep.subr.bf16.mxu1 %v907_v36  ;;  %160 = vst [vmem:[#allocation4 + $0x38] sm:$0xf] %v777_v27  ;;  %v778_v28 = vld [vmem:[%s1222_s2 + $0x7c] sm:$0xf]  ;;  %v767_v29 = vld [vmem:[%s1222_s2 + $0x24] sm:$0xf] }
  0x21   :  { %162 = vst [vmem:[#allocation4 + $0x3c] sm:$0xf] %v778_v28  ;;  %140 = vst [vmem:[#allocation4 + $0x10] sm:$0xf] %v767_v29  ;;  %v768_v30 = vld [vmem:[%s1222_s2 + $0x2c] sm:$0xf] }
  0x22   :  { %615 = vperm.xlu1 %901, %v561_v55   ;;  %610 = vperm.xlu0 %900, %v560_v56   ;;  %v775_v31 = vld [vmem:[%s1222_s2 + $0x64] sm:$0xf]  ;;  %142 = vst [vmem:[#allocation4 + $0x14] sm:$0xf] %v768_v30  ;;  %v776_v32 = vld [vmem:[%s1222_s2 + $0x6c] sm:$0xf] }
  0x23   :  { %862 = vmatpush3.bf16.msra.mxu0 %v907_v36  ;;  %896 = vmatpush3.bf16.msra.mxu1 %v907_v36  ;;  %156 = vst [vmem:[#allocation4 + $0x30] sm:$0xf] %v775_v31  ;;  %158 = vst [vmem:[#allocation4 + $0x34] sm:$0xf] %v776_v32  ;;  %v832_v46 = vld [vmem:[#allocation4 + $0x28] sm:$0xff]  }
  0x24   :  { %863 = vmatprep.subr.bf16.mxu0 %v908_v39  ;;  %889 = vmatprep.subr.bf16.mxu1 %v908_v39  ;;  %v797_v47 = vld [vmem:[#allocation4] sm:$0xff]   ;;  %v818_v52 = vunpack.c.l.bf16 %v832_v46 }
  0x25   :  { %v831_v48 = vld [vmem:[#allocation4 + $0x20] sm:$0xff]   ;;  %v798_v55 = vunpack.c.l.bf16 %v797_v47  ;;  %v799_v4 = vunpack.c.h.bf16 %v797_v47 }
  0x26   :  { %625 = vperm.xlu1 %901, %v563_v0   ;;  %620 = vperm.xlu0 %900, %v562_v1   ;;  %v814_v56 = vunpack.c.l.bf16 %v831_v48  ;;  %v1148_v63 = vld [vmem:[%s1224_s4] ss:$0 sm:$0xff]  ;;  %v815_v5 = vunpack.c.h.bf16 %v831_v48 }
  0x27   :  { %864 = vmatpush3.bf16.msra.mxu0 %v908_v39  ;;  %897 = vmatpush3.bf16.msra.mxu1 %v908_v39 }
  0x28   :  { %865 = vmatprep.subr.bf16.mxu0 %v909_v45  ;;  %890 = vmatprep.subr.bf16.mxu1 %v909_v45  ;;  %v834_v17 = vld [vmem:[#allocation4 + $0x38] sm:$0xff]  }
  0x29   :  { %v829_v22 = vld [vmem:[#allocation4 + $0x10] sm:$0xff]  }
  0x2a   :  { %635 = vperm.xlu1 %901, %v565_v11   ;;  %630 = vperm.xlu0 %900, %v564_v12   ;;  %v833_v23 = vld [vmem:[#allocation4 + $0x30] sm:$0xff]  }
  0x2b   :  { %866 = vmatpush3.bf16.msra.mxu0 %v909_v45  ;;  %898 = vmatpush3.bf16.msra.mxu1 %v909_v45  ;;  %v828_v45 = vld [vmem:[#allocation4 + $0x8] sm:$0xff]  }
  0x2c   :  { %v802_v51 = vunpack.c.l.bf16 %v828_v45 }
  0x2e   :  { %868 = vmatmul.mubr.bf16.vlgmr.msra.gmra.mrb[0].mxu0 %v780_v61  ;;  %876 = vmatmul.mubr.bf16.vlgmr.msra.gmra.mrb[0].mxu1 %v784_v62  ;;  %v803_v61 = vunpack.c.h.bf16 %v828_v45  ;;  %v819_v62 = vunpack.c.h.bf16 %v832_v46 }
  0x2f   :  { %871 = vmatprep.mubr.bf16.mxu0 %v781_v2  ;;  %879 = vmatprep.mubr.bf16.mxu1 %v785_v3 }
  0x30   :  { %645 = vperm.xlu1 %901, %v567_v15   ;;  %640 = vperm.xlu0 %900, %v566_v16   ;;  %v830_v16 = vld [vmem:[#allocation4 + $0x18] sm:$0xff]  }
  0x31   :  { %v810_v32 = vunpack.c.l.bf16 %v830_v16  ;;  %v811_v48 = vunpack.c.h.bf16 %v830_v16 }
  0x36   :  { %872 = vmatmul.mubr.bf16.gmra.mrb[4].mxu0 %v782_v13  ;;  %880 = vmatmul.mubr.bf16.gmra.mrb[4].mxu1 %v786_v14 }
  0x91   :  { %v581_v33 = vpop.permute.xlu1 %580  ;;  %v571_v34 = vpop.permute.xlu0 %570 }
  0x95   :  { %v586_v35 = vpop.permute.xlu1 %585  ;;  %v576_v36 = vpop.permute.xlu0 %575 }
  0x99   :  { %v1133_v37 = vpop.permute.xlu1 %595  ;;  %v1135_v38 = vpop.permute.xlu0 %590 }
  0x9d   :  { %v1137_v39 = vpop.permute.xlu1 %605  ;;  %v1139_v40 = vpop.permute.xlu0 %600 }
  0xa1   :  { %v616_v41 = vpop.permute.xlu1 %615  ;;  %v611_v42 = vpop.permute.xlu0 %610 }
  0xa5   :  { %v626_v43 = vpop.permute.xlu1 %625  ;;  %v621_v44 = vpop.permute.xlu0 %620 }
  0xa9   :  { %v1141_v49 = vpop.permute.xlu1 %635  ;;  %v1143_v50 = vpop.permute.xlu0 %630 }
  0xaf   :  { %v646_v28 = vpop.permute.xlu1 %645  ;;  %v641_v29 = vpop.permute.xlu0 %640 }
 0x101   :  { %v869_v53 = vpop.f32.mrb[0].mxu0  ;;  %v877_v54 = vpop.f32.mrb[0].mxu1 }
 0x102   :  { %v650_v57 = vmul.f32 %v869_v53, %v581_v33  ;;  %v658_v58 = vmul.f32 %v877_v54, %v621_v44  ;;  %v438_v59 = vpop.f32.mrb[1].mxu0  ;;  %v470_v60 = vpop.f32.mrb[1].mxu1  ;;  %v826_v33 = vunpack.c.l.bf16 %v834_v17 }
 0x103   :  { %v648_v0 = vmul.f32 %v571_v34, %v438_v59  ;;  %v656_v1 = vmul.f32 %v611_v42, %v470_v60  ;;  %v870_v2 = vpop.f32.mrb[2].mxu0  ;;  %v878_v3 = vpop.f32.mrb[2].mxu1  ;;  %v806_v42 = vunpack.c.l.bf16 %v829_v22 }
 0x104   :  { %v698_v6 = vadd.f32 %v802_v51, %v650_v57  ;;  %v706_v7 = vadd.f32 %v818_v52, %v658_v58  ;;  %v651_v8 = vmul.f32 %v870_v2, %v586_v35  ;;  %v659_v9 = vmul.f32 %v878_v3, %v626_v43  ;;  %v441_v10 = vpop.f32.mrb[3].mxu0  ;;  %v473_v11 = vpop.f32.mrb[3].mxu1 }
 0x105   :  { %v696_v12 = vadd.f32 %v798_v55, %v648_v0  ;;  %v704_v13 = vadd.f32 %v814_v56, %v656_v1  ;;  %v649_v14 = vmul.f32 %v576_v36, %v441_v10  ;;  %v657_v15 = vmul.f32 %v616_v41, %v473_v11 }
 0x106   :  { %v721_v18 = vadd.f32 %v1148_v63, %v698_v6  ;;  %v729_v19 = vadd.f32 %v1148_v63, %v706_v7  ;;  %v699_v20 = vadd.f32 %v803_v61, %v651_v8  ;;  %v707_v21 = vadd.f32 %v819_v62, %v659_v9 }
 0x107   :  { %v719_v24 = vadd.f32 %v1148_v63, %v696_v12  ;;  %v727_v25 = vadd.f32 %v1148_v63, %v704_v13  ;;  %v697_v26 = vadd.f32 %v799_v4, %v649_v14  ;;  %v705_v27 = vadd.f32 %v815_v5, %v657_v15 }
 0x108   :  { %737 = vst [vmem:[%s1225_s5 + $0x10] sm:$0xff] %v721_v18  ;;  %745 = vst [vmem:[%s1225_s5 + $0x50] sm:$0xff] %v729_v19  ;;  %v722_v30 = vadd.f32 %v1148_v63, %v699_v20  ;;  %v730_v31 = vadd.f32 %v1148_v63, %v707_v21  ;;  %v822_v43 = vunpack.c.l.bf16 %v833_v23  ;;  %v827_v51 = vunpack.c.h.bf16 %v834_v17 }
 0x109   :  { %735 = vst [vmem:[%s1225_s5] sm:$0xff] %v719_v24  ;;  %743 = vst [vmem:[%s1225_s5 + $0x40] sm:$0xff] %v727_v25  ;;  %v720_v34 = vadd.f32 %v1148_v63, %v697_v26  ;;  %v728_v35 = vadd.f32 %v1148_v63, %v705_v27  ;;  %v873_v36 = vpop.f32.mrb[4].mxu0  ;;  %v881_v41 = vpop.f32.mrb[4].mxu1  ;;  %v823_v56 = vunpack.c.h.bf16 %v833_v23 }
 0x10a   :  { %738 = vst [vmem:[%s1225_s5 + $0x18] sm:$0xff] %v722_v30  ;;  %746 = vst [vmem:[%s1225_s5 + $0x58] sm:$0xff] %v730_v31  ;;  %v654_v44 = vmul.f32 %v873_v36, %v1139_v40  ;;  %v662_v45 = vmul.f32 %v881_v41, %v641_v29  ;;  %v454_v46 = vpop.f32.mrb[5].mxu0  ;;  %v486_v47 = vpop.f32.mrb[5].mxu1  ;;  %v807_v40 = vunpack.c.h.bf16 %v829_v22 }
 0x10b   :  { %736 = vst [vmem:[%s1225_s5 + $0x8] sm:$0xff] %v720_v34  ;;  %744 = vst [vmem:[%s1225_s5 + $0x48] sm:$0xff] %v728_v35  ;;  %v652_v52 = vmul.f32 %v1135_v38, %v454_v46  ;;  %v660_v53 = vmul.f32 %v1143_v50, %v486_v47  ;;  %v874_v54 = vpop.f32.mrb[6].mxu0  ;;  %v882_v55 = vpop.f32.mrb[6].mxu1 }
 0x10c   :  { %v702_v57 = vadd.f32 %v810_v32, %v654_v44  ;;  %v710_v58 = vadd.f32 %v826_v33, %v662_v45  ;;  %v655_v59 = vmul.f32 %v874_v54, %v1137_v39  ;;  %v663_v60 = vmul.f32 %v882_v55, %v646_v28  ;;  %v457_v61 = vpop.f32.mrb[7].mxu0  ;;  %v489_v62 = vpop.f32.mrb[7].mxu1 }
 0x10d   :  { %v700_v0 = vadd.f32 %v806_v42, %v652_v52  ;;  %v708_v1 = vadd.f32 %v822_v43, %v660_v53  ;;  %v653_v2 = vmul.f32 %v1133_v37, %v457_v61  ;;  %v661_v3 = vmul.f32 %v1141_v49, %v489_v62 }
 0x10e   :  { %v725_v38 = vadd.f32 %v1148_v63, %v702_v57  ;;  %v733_v50 = vadd.f32 %v1148_v63, %v710_v58  ;;  %v703_v4 = vadd.f32 %v811_v48, %v655_v59  ;;  %v711_v5 = vadd.f32 %v827_v51, %v663_v60 }
 0x10f   :  { %v723_v6 = vadd.f32 %v1148_v63, %v700_v0  ;;  %v731_v7 = vadd.f32 %v1148_v63, %v708_v1  ;;  %v701_v39 = vadd.f32 %v807_v40, %v653_v2  ;;  %v709_v8 = vadd.f32 %v823_v56, %v661_v3 }
 0x110   :  { %741 = vst [vmem:[%s1225_s5 + $0x30] sm:$0xff] %v725_v38  ;;  %749 = vst [vmem:[%s1225_s5 + $0x70] sm:$0xff] %v733_v50  ;;  %v726_v37 = vadd.f32 %v1148_v63, %v703_v4  ;;  %v734_v49 = vadd.f32 %v1148_v63, %v711_v5 }
 0x111   :  { %739 = vst [vmem:[%s1225_s5 + $0x20] sm:$0xff] %v723_v6  ;;  %747 = vst [vmem:[%s1225_s5 + $0x60] sm:$0xff] %v731_v7  ;;  %v724_v9 = vadd.f32 %v1148_v63, %v701_v39  ;;  %v732_v10 = vadd.f32 %v1148_v63, %v709_v8 }
 0x112   :  { %742 = vst [vmem:[%s1225_s5 + $0x38] sm:$0xff] %v726_v37  ;;  %750 = vst [vmem:[%s1225_s5 + $0x78] sm:$0xff] %v734_v49 }
 0x113   :  { %740 = vst [vmem:[%s1225_s5 + $0x28] sm:$0xff] %v724_v9  ;;  %748 = vst [vmem:[%s1225_s5 + $0x68] sm:$0xff] %v732_v10 }

</bundles_post_ra>
